<compile_context>
chip_gen: v5e
topology: v5e:2x2
jax: 0.10.0
libtpu: 0.0.40
codegen_flags: <defaults>
</compile_context>

<pallas_src>
import jax
import jax.numpy as jnp
from jax.experimental import pallas as pl
from jax.experimental.pallas import tpu as pltpu

CSI_DIM = 8
RX_DIM = 4
INPUT_DIM = CSI_DIM + RX_DIM          # 12
OUTPUT_DIM = 4
HIDDEN_DIM = 128
NUM_BLOCKS = 4
TILE_N = 2048                         # multiple of 8 (sublane) and 256 (MXU depth)


def _round_up(x, m):
    return ((x + m - 1) // m) * m


def _dnn_res_eq_kernel(x_ref,
                       w_in_ref, b_in_ref,
                       w1_ref, b1_ref, w2_ref, b2_ref,
                       w_out_ref, b_out_ref, o_ref):
    # Input Linear(12,128) + ReLU: single K=12 bf16 matmul, f32 accumulation.
    h = jnp.dot(x_ref[...].astype(jnp.bfloat16), w_in_ref[...],
                preferred_element_type=jnp.float32)
    h = jnp.maximum(h + b_in_ref[...], 0.0)

    # Residual blocks, statically unrolled; bf16 MXU matmuls with f32
    # accumulation, elementwise (bias / ReLU / residual) kept f32 on the VPU
    # (portable to v5e; bf16-elementwise on v6e/v7x is an optional extra).
    for i in range(NUM_BLOCKS):
        t = jnp.dot(h.astype(jnp.bfloat16), w1_ref[i],
                    preferred_element_type=jnp.float32)
        t = jnp.maximum(t + b1_ref[i], 0.0)
        t = jnp.dot(t.astype(jnp.bfloat16), w2_ref[i],
                    preferred_element_type=jnp.float32) + b2_ref[i]
        h = jnp.maximum(t + h, 0.0)

    # Output Linear(128, 4) — bf16 matmul; masked 4-lane store is negligible.
    out = jnp.dot(h.astype(jnp.bfloat16), w_out_ref[...],
                  preferred_element_type=jnp.float32)
    o_ref[...] = out + b_out_ref[...]


def dnn_res_eq_pallas(x_f, params, tile_n=TILE_N):
    """x_f: (N, 12) f32 (csi||rx). Returns (N, 4) f32."""
    n = x_f.shape[0]
    tile_n = min(tile_n, _round_up(n, 8))
    # Prefer >= 2 grid steps (megacore sharding on v7x) when data permits.
    if n > 8 and pl.cdiv(n, tile_n) < 2:
        tile_n = max(8, _round_up(pl.cdiv(n, 2), 8))
    grid = (pl.cdiv(n, tile_n),)

    def row_spec(f):
        return pl.BlockSpec((tile_n, f), lambda i: (i, 0))

    def const_spec(shape):
        nd = len(shape)
        return pl.BlockSpec(shape, lambda i, _nd=nd: (0,) * _nd)

    # bf16 weights for every MXU matmul; biases stay f32 for the VPU adds.
    w_in_bf16 = params["w_in"].astype(jnp.bfloat16)    # (12, 128)
    w1_bf16 = params["w1"].astype(jnp.bfloat16)        # (4, 128, 256)
    w2_bf16 = params["w2"].astype(jnp.bfloat16)        # (4, 256, 128)
    w_out_bf16 = params["w_out"].astype(jnp.bfloat16)  # (128, 4)

    return pl.pallas_call(
        _dnn_res_eq_kernel,
        grid=grid,
        out_shape=jax.ShapeDtypeStruct((n, OUTPUT_DIM), jnp.float32),
        in_specs=[
            row_spec(INPUT_DIM),
            const_spec(w_in_bf16.shape),
            const_spec(params["b_in"].shape),
            const_spec(w1_bf16.shape),
            const_spec(params["b1"].shape),
            const_spec(w2_bf16.shape),
            const_spec(params["b2"].shape),
            const_spec(w_out_bf16.shape),
            const_spec(params["b_out"].shape),
        ],
        out_specs=row_spec(OUTPUT_DIM),
        compiler_params=pltpu.CompilerParams(
            dimension_semantics=("parallel",),
            vmem_limit_bytes=32 * 1024 * 1024,
        ),
    )(x_f, w_in_bf16, params["b_in"],
      w1_bf16, params["b1"], w2_bf16, params["b2"],
      w_out_bf16, params["b_out"])


def dnn_res_eq_forward(csi, rx_signal, params):
    """Matches DNNResEQ.forward semantics.

    csi:       (B, S1, S2, ...) — trailing dims flatten to 8
    rx_signal: (B, S1, S2, ...) — trailing dims flatten to 4
    returns:   (B, S1, S2, 2, 2)
    """
    lead = csi.shape[:3]
    csi_f = csi.reshape(*lead, -1).astype(jnp.float32)
    rx_f = rx_signal.reshape(*lead, -1).astype(jnp.float32)
    # Wrapper-side concat (HBM cost ~96 B/row, negligible vs ~0.5 MFLOP/row);
    # presents a single lane-dense (N, 12) row stream to the kernel.
    x_f = jnp.concatenate([csi_f, rx_f], axis=-1).reshape(-1, INPUT_DIM)
    y_flat = dnn_res_eq_pallas(x_f, params)                 # (N, 4)
    return y_flat.reshape(*lead, 2, 2)


def _linear_init(key, fan_in, fan_out):
    """PyTorch-style uniform(-1/sqrt(fan_in), 1/sqrt(fan_in)) init (deterministic)."""
    kw, kb = jax.random.split(key)
    bound = 1.0 / jnp.sqrt(jnp.float32(fan_in))
    w = jax.random.uniform(kw, (fan_in, fan_out), jnp.float32, -bound, bound)
    b = jax.random.uniform(kb, (1, fan_out), jnp.float32, -bound, bound)
    return w, b


def init_params(key):
    keys = jax.random.split(key, 2 + 2 * NUM_BLOCKS)
    w_in, b_in = _linear_init(keys[0], INPUT_DIM, HIDDEN_DIM)
    w_out, b_out = _linear_init(keys[1], HIDDEN_DIM, OUTPUT_DIM)
    w1s, b1s, w2s, b2s = [], [], [], []
    for i in range(NUM_BLOCKS):
        w1, b1 = _linear_init(keys[2 + 2 * i], HIDDEN_DIM, 2 * HIDDEN_DIM)
        w2, b2 = _linear_init(keys[3 + 2 * i], 2 * HIDDEN_DIM, HIDDEN_DIM)
        w1s.append(w1); b1s.append(b1); w2s.append(w2); b2s.append(b2)
    return {
        "w_in": w_in, "b_in": b_in,
        "w1": jnp.stack(w1s), "b1": jnp.stack(b1s),     # (4,128,256), (4,1,256)
        "w2": jnp.stack(w2s), "b2": jnp.stack(b2s),     # (4,256,128), (4,1,128)
        "w_out": w_out, "b_out": b_out,
    }


def _reference_forward(csi, rx_signal, params):
    """Pure-JAX f32 reference for correctness check."""
    lead = csi.shape[:3]
    x = jnp.concatenate(
        [csi.reshape(*lead, -1), rx_signal.reshape(*lead, -1)], axis=-1
    ).reshape(-1, INPUT_DIM).astype(jnp.float32)
    h = jnp.maximum(x @ params["w_in"] + params["b_in"], 0.0)
    for i in range(NUM_BLOCKS):
        t = jnp.maximum(h @ params["w1"][i] + params["b1"][i], 0.0)
        t = t @ params["w2"][i] + params["b2"][i]
        h = jnp.maximum(t + h, 0.0)
    y = h @ params["w_out"] + params["b_out"]
    return y.reshape(*lead, 2, 2)


if __name__ == "__main__":
    key = jax.random.PRNGKey(0)
    k_csi, k_rx, k_params = jax.random.split(key, 3)

    # Small shapes consistent with the module: csi trailing dims flatten to 8,
    # rx_signal trailing dims flatten to 4, concat -> input_dim = 12.
    B, S1, S2 = 2, 4, 8
    csi = jax.random.normal(k_csi, (B, S1, S2, 2, 2, 2), jnp.float32)
    rx = jax.random.normal(k_rx, (B, S1, S2, 2, 2), jnp.float32)

    params = init_params(k_params)

    out = dnn_res_eq_forward(csi, rx, params)
    out = jax.block_until_ready(out)
    assert out.shape == (B, S1, S2, 2, 2), out.shape

    # Tolerance relaxed vs the f32 reference: all matmuls run in bf16
    # (f32 accumulation) per the perf review.
    ref = _reference_forward(csi, rx, params)
    assert jnp.allclose(out, ref, atol=7e-2, rtol=7e-2), "mismatch vs reference"

    print("KERNEL_OK")
</pallas_src>

<mosaic_0001>
module attributes {stable_mosaic.version = 11 : i64} {
  func.func @_dnn_res_eq_kernel(%arg0: i32, %arg1: memref<32x12xf32, #tpu.memory_space<vmem>>, %arg2: memref<12x128xbf16, #tpu.memory_space<vmem>>, %arg3: memref<1x128xf32, #tpu.memory_space<vmem>>, %arg4: memref<4x128x256xbf16, #tpu.memory_space<vmem>>, %arg5: memref<4x1x256xf32, #tpu.memory_space<vmem>>, %arg6: memref<4x256x128xbf16, #tpu.memory_space<vmem>>, %arg7: memref<4x1x128xf32, #tpu.memory_space<vmem>>, %arg8: memref<128x4xbf16, #tpu.memory_space<vmem>>, %arg9: memref<1x4xf32, #tpu.memory_space<vmem>>, %arg10: memref<32x4xf32, #tpu.memory_space<vmem>>) attributes {dimension_semantics = [#tpu.dimension_semantics<parallel>], iteration_bounds = array<i64: 2>, scalar_prefetch = 0 : i64, scratch_operands = 0 : i64, tpu.core_type = #tpu.core_type<tc>, window_params = [{transform_indices = @transform_0, window_bounds = array<i64: 32, 12>}, {pipeline_mode = #tpu.pipeline_mode<synchronous>, transform_indices = @transform_1, window_bounds = array<i64: 12, 128>}, {pipeline_mode = #tpu.pipeline_mode<synchronous>, transform_indices = @transform_2, window_bounds = array<i64: 1, 128>}, {pipeline_mode = #tpu.pipeline_mode<synchronous>, transform_indices = @transform_3, window_bounds = array<i64: 4, 128, 256>}, {pipeline_mode = #tpu.pipeline_mode<synchronous>, transform_indices = @transform_4, window_bounds = array<i64: 4, 1, 256>}, {pipeline_mode = #tpu.pipeline_mode<synchronous>, transform_indices = @transform_5, window_bounds = array<i64: 4, 256, 128>}, {pipeline_mode = #tpu.pipeline_mode<synchronous>, transform_indices = @transform_6, window_bounds = array<i64: 4, 1, 128>}, {pipeline_mode = #tpu.pipeline_mode<synchronous>, transform_indices = @transform_7, window_bounds = array<i64: 128, 4>}, {pipeline_mode = #tpu.pipeline_mode<synchronous>, transform_indices = @transform_8, window_bounds = array<i64: 1, 4>}, {transform_indices = @transform_9, window_bounds = array<i64: 32, 4>}]} {
    %c0 = arith.constant 0 : index
    %c0_0 = arith.constant 0 : index
    %0 = vector.load %arg1[%c0, %c0_0] : memref<32x12xf32, #tpu.memory_space<vmem>>, vector<32x12xf32>
    %1 = arith.truncf %0 : vector<32x12xf32> to vector<32x12xbf16>
    %c0_1 = arith.constant 0 : index
    %c0_2 = arith.constant 0 : index
    %2 = vector.load %arg2[%c0_1, %c0_2] : memref<12x128xbf16, #tpu.memory_space<vmem>>, vector<12x128xbf16>
    %cst = arith.constant dense<0.000000e+00> : vector<32x128xf32>
    %3 = tpu.matmul %1, %2, %cst {dimension_numbers = #tpu.dot_dimension_numbers<[1], [0], [0], [1], [0, 0, 1, 1], [], []>} : vector<32x12xbf16>, vector<12x128xbf16>, vector<32x128xf32> -> vector<32x128xf32>
    %c0_3 = arith.constant 0 : index
    %c0_4 = arith.constant 0 : index
    %4 = vector.load %arg3[%c0_3, %c0_4] : memref<1x128xf32, #tpu.memory_space<vmem>>, vector<1x128xf32>
    %5 = vector.broadcast %4 : vector<1x128xf32> to vector<32x128xf32>
    %6 = arith.addf %3, %5 : vector<32x128xf32>
    %cst_5 = arith.constant 0.000000e+00 : f32
    %7 = vector.broadcast %cst_5 : f32 to vector<32x128xf32>
    %8 = arith.maximumf %6, %7 : vector<32x128xf32>
    %9 = arith.truncf %8 : vector<32x128xf32> to vector<32x128xbf16>
    %c0_6 = arith.constant 0 : index
    %c0_7 = arith.constant 0 : index
    %c0_8 = arith.constant 0 : index
    %10 = vector.load %arg4[%c0_6, %c0_7, %c0_8] : memref<4x128x256xbf16, #tpu.memory_space<vmem>>, vector<1x128x256xbf16>
    %11 = vector.shape_cast %10 : vector<1x128x256xbf16> to vector<128x256xbf16>
    %cst_9 = arith.constant dense<0.000000e+00> : vector<32x256xf32>
    %12 = tpu.matmul %9, %11, %cst_9 {dimension_numbers = #tpu.dot_dimension_numbers<[1], [0], [0], [1], [0, 0, 1, 1], [], []>} : vector<32x128xbf16>, vector<128x256xbf16>, vector<32x256xf32> -> vector<32x256xf32>
    %c0_10 = arith.constant 0 : index
    %c0_11 = arith.constant 0 : index
    %c0_12 = arith.constant 0 : index
    %13 = vector.load %arg5[%c0_10, %c0_11, %c0_12] : memref<4x1x256xf32, #tpu.memory_space<vmem>>, vector<1x1x256xf32>
    %14 = vector.shape_cast %13 : vector<1x1x256xf32> to vector<1x256xf32>
    %15 = vector.broadcast %14 : vector<1x256xf32> to vector<32x256xf32>
    %16 = arith.addf %12, %15 : vector<32x256xf32>
    %cst_13 = arith.constant 0.000000e+00 : f32
    %17 = vector.broadcast %cst_13 : f32 to vector<32x256xf32>
    %18 = arith.maximumf %16, %17 : vector<32x256xf32>
    %19 = arith.truncf %18 : vector<32x256xf32> to vector<32x256xbf16>
    %c0_14 = arith.constant 0 : index
    %c0_15 = arith.constant 0 : index
    %c0_16 = arith.constant 0 : index
    %20 = vector.load %arg6[%c0_14, %c0_15, %c0_16] : memref<4x256x128xbf16, #tpu.memory_space<vmem>>, vector<1x256x128xbf16>
    %21 = vector.shape_cast %20 : vector<1x256x128xbf16> to vector<256x128xbf16>
    %cst_17 = arith.constant dense<0.000000e+00> : vector<32x128xf32>
    %22 = tpu.matmul %19, %21, %cst_17 {dimension_numbers = #tpu.dot_dimension_numbers<[1], [0], [0], [1], [0, 0, 1, 1], [], []>} : vector<32x256xbf16>, vector<256x128xbf16>, vector<32x128xf32> -> vector<32x128xf32>
    %c0_18 = arith.constant 0 : index
    %c0_19 = arith.constant 0 : index
    %c0_20 = arith.constant 0 : index
    %23 = vector.load %arg7[%c0_18, %c0_19, %c0_20] : memref<4x1x128xf32, #tpu.memory_space<vmem>>, vector<1x1x128xf32>
    %24 = vector.shape_cast %23 : vector<1x1x128xf32> to vector<1x128xf32>
    %25 = vector.broadcast %24 : vector<1x128xf32> to vector<32x128xf32>
    %26 = arith.addf %22, %25 : vector<32x128xf32>
    %27 = arith.addf %26, %8 : vector<32x128xf32>
    %cst_21 = arith.constant 0.000000e+00 : f32
    %28 = vector.broadcast %cst_21 : f32 to vector<32x128xf32>
    %29 = arith.maximumf %27, %28 : vector<32x128xf32>
    %30 = arith.truncf %29 : vector<32x128xf32> to vector<32x128xbf16>
    %c1 = arith.constant 1 : index
    %c0_22 = arith.constant 0 : index
    %c0_23 = arith.constant 0 : index
    %31 = vector.load %arg4[%c1, %c0_22, %c0_23] : memref<4x128x256xbf16, #tpu.memory_space<vmem>>, vector<1x128x256xbf16>
    %32 = vector.shape_cast %31 : vector<1x128x256xbf16> to vector<128x256xbf16>
    %cst_24 = arith.constant dense<0.000000e+00> : vector<32x256xf32>
    %33 = tpu.matmul %30, %32, %cst_24 {dimension_numbers = #tpu.dot_dimension_numbers<[1], [0], [0], [1], [0, 0, 1, 1], [], []>} : vector<32x128xbf16>, vector<128x256xbf16>, vector<32x256xf32> -> vector<32x256xf32>
    %c1_25 = arith.constant 1 : index
    %c0_26 = arith.constant 0 : index
    %c0_27 = arith.constant 0 : index
    %34 = vector.load %arg5[%c1_25, %c0_26, %c0_27] : memref<4x1x256xf32, #tpu.memory_space<vmem>>, vector<1x1x256xf32>
    %35 = vector.shape_cast %34 : vector<1x1x256xf32> to vector<1x256xf32>
    %36 = vector.broadcast %35 : vector<1x256xf32> to vector<32x256xf32>
    %37 = arith.addf %33, %36 : vector<32x256xf32>
    %cst_28 = arith.constant 0.000000e+00 : f32
    %38 = vector.broadcast %cst_28 : f32 to vector<32x256xf32>
    %39 = arith.maximumf %37, %38 : vector<32x256xf32>
    %40 = arith.truncf %39 : vector<32x256xf32> to vector<32x256xbf16>
    %c1_29 = arith.constant 1 : index
    %c0_30 = arith.constant 0 : index
    %c0_31 = arith.constant 0 : index
    %41 = vector.load %arg6[%c1_29, %c0_30, %c0_31] : memref<4x256x128xbf16, #tpu.memory_space<vmem>>, vector<1x256x128xbf16>
    %42 = vector.shape_cast %41 : vector<1x256x128xbf16> to vector<256x128xbf16>
    %cst_32 = arith.constant dense<0.000000e+00> : vector<32x128xf32>
    %43 = tpu.matmul %40, %42, %cst_32 {dimension_numbers = #tpu.dot_dimension_numbers<[1], [0], [0], [1], [0, 0, 1, 1], [], []>} : vector<32x256xbf16>, vector<256x128xbf16>, vector<32x128xf32> -> vector<32x128xf32>
    %c1_33 = arith.constant 1 : index
    %c0_34 = arith.constant 0 : index
    %c0_35 = arith.constant 0 : index
    %44 = vector.load %arg7[%c1_33, %c0_34, %c0_35] : memref<4x1x128xf32, #tpu.memory_space<vmem>>, vector<1x1x128xf32>
    %45 = vector.shape_cast %44 : vector<1x1x128xf32> to vector<1x128xf32>
    %46 = vector.broadcast %45 : vector<1x128xf32> to vector<32x128xf32>
    %47 = arith.addf %43, %46 : vector<32x128xf32>
    %48 = arith.addf %47, %29 : vector<32x128xf32>
    %cst_36 = arith.constant 0.000000e+00 : f32
    %49 = vector.broadcast %cst_36 : f32 to vector<32x128xf32>
    %50 = arith.maximumf %48, %49 : vector<32x128xf32>
    %51 = arith.truncf %50 : vector<32x128xf32> to vector<32x128xbf16>
    %c2 = arith.constant 2 : index
    %c0_37 = arith.constant 0 : index
    %c0_38 = arith.constant 0 : index
    %52 = vector.load %arg4[%c2, %c0_37, %c0_38] : memref<4x128x256xbf16, #tpu.memory_space<vmem>>, vector<1x128x256xbf16>
    %53 = vector.shape_cast %52 : vector<1x128x256xbf16> to vector<128x256xbf16>
    %cst_39 = arith.constant dense<0.000000e+00> : vector<32x256xf32>
    %54 = tpu.matmul %51, %53, %cst_39 {dimension_numbers = #tpu.dot_dimension_numbers<[1], [0], [0], [1], [0, 0, 1, 1], [], []>} : vector<32x128xbf16>, vector<128x256xbf16>, vector<32x256xf32> -> vector<32x256xf32>
    %c2_40 = arith.constant 2 : index
    %c0_41 = arith.constant 0 : index
    %c0_42 = arith.constant 0 : index
    %55 = vector.load %arg5[%c2_40, %c0_41, %c0_42] : memref<4x1x256xf32, #tpu.memory_space<vmem>>, vector<1x1x256xf32>
    %56 = vector.shape_cast %55 : vector<1x1x256xf32> to vector<1x256xf32>
    %57 = vector.broadcast %56 : vector<1x256xf32> to vector<32x256xf32>
    %58 = arith.addf %54, %57 : vector<32x256xf32>
    %cst_43 = arith.constant 0.000000e+00 : f32
    %59 = vector.broadcast %cst_43 : f32 to vector<32x256xf32>
    %60 = arith.maximumf %58, %59 : vector<32x256xf32>
    %61 = arith.truncf %60 : vector<32x256xf32> to vector<32x256xbf16>
    %c2_44 = arith.constant 2 : index
    %c0_45 = arith.constant 0 : index
    %c0_46 = arith.constant 0 : index
    %62 = vector.load %arg6[%c2_44, %c0_45, %c0_46] : memref<4x256x128xbf16, #tpu.memory_space<vmem>>, vector<1x256x128xbf16>
    %63 = vector.shape_cast %62 : vector<1x256x128xbf16> to vector<256x128xbf16>
    %cst_47 = arith.constant dense<0.000000e+00> : vector<32x128xf32>
    %64 = tpu.matmul %61, %63, %cst_47 {dimension_numbers = #tpu.dot_dimension_numbers<[1], [0], [0], [1], [0, 0, 1, 1], [], []>} : vector<32x256xbf16>, vector<256x128xbf16>, vector<32x128xf32> -> vector<32x128xf32>
    %c2_48 = arith.constant 2 : index
    %c0_49 = arith.constant 0 : index
    %c0_50 = arith.constant 0 : index
    %65 = vector.load %arg7[%c2_48, %c0_49, %c0_50] : memref<4x1x128xf32, #tpu.memory_space<vmem>>, vector<1x1x128xf32>
    %66 = vector.shape_cast %65 : vector<1x1x128xf32> to vector<1x128xf32>
    %67 = vector.broadcast %66 : vector<1x128xf32> to vector<32x128xf32>
    %68 = arith.addf %64, %67 : vector<32x128xf32>
    %69 = arith.addf %68, %50 : vector<32x128xf32>
    %cst_51 = arith.constant 0.000000e+00 : f32
    %70 = vector.broadcast %cst_51 : f32 to vector<32x128xf32>
    %71 = arith.maximumf %69, %70 : vector<32x128xf32>
    %72 = arith.truncf %71 : vector<32x128xf32> to vector<32x128xbf16>
    %c3 = arith.constant 3 : index
    %c0_52 = arith.constant 0 : index
    %c0_53 = arith.constant 0 : index
    %73 = vector.load %arg4[%c3, %c0_52, %c0_53] : memref<4x128x256xbf16, #tpu.memory_space<vmem>>, vector<1x128x256xbf16>
    %74 = vector.shape_cast %73 : vector<1x128x256xbf16> to vector<128x256xbf16>
    %cst_54 = arith.constant dense<0.000000e+00> : vector<32x256xf32>
    %75 = tpu.matmul %72, %74, %cst_54 {dimension_numbers = #tpu.dot_dimension_numbers<[1], [0], [0], [1], [0, 0, 1, 1], [], []>} : vector<32x128xbf16>, vector<128x256xbf16>, vector<32x256xf32> -> vector<32x256xf32>
    %c3_55 = arith.constant 3 : index
    %c0_56 = arith.constant 0 : index
    %c0_57 = arith.constant 0 : index
    %76 = vector.load %arg5[%c3_55, %c0_56, %c0_57] : memref<4x1x256xf32, #tpu.memory_space<vmem>>, vector<1x1x256xf32>
    %77 = vector.shape_cast %76 : vector<1x1x256xf32> to vector<1x256xf32>
    %78 = vector.broadcast %77 : vector<1x256xf32> to vector<32x256xf32>
    %79 = arith.addf %75, %78 : vector<32x256xf32>
    %cst_58 = arith.constant 0.000000e+00 : f32
    %80 = vector.broadcast %cst_58 : f32 to vector<32x256xf32>
    %81 = arith.maximumf %79, %80 : vector<32x256xf32>
    %82 = arith.truncf %81 : vector<32x256xf32> to vector<32x256xbf16>
    %c3_59 = arith.constant 3 : index
    %c0_60 = arith.constant 0 : index
    %c0_61 = arith.constant 0 : index
    %83 = vector.load %arg6[%c3_59, %c0_60, %c0_61] : memref<4x256x128xbf16, #tpu.memory_space<vmem>>, vector<1x256x128xbf16>
    %84 = vector.shape_cast %83 : vector<1x256x128xbf16> to vector<256x128xbf16>
    %cst_62 = arith.constant dense<0.000000e+00> : vector<32x128xf32>
    %85 = tpu.matmul %82, %84, %cst_62 {dimension_numbers = #tpu.dot_dimension_numbers<[1], [0], [0], [1], [0, 0, 1, 1], [], []>} : vector<32x256xbf16>, vector<256x128xbf16>, vector<32x128xf32> -> vector<32x128xf32>
    %c3_63 = arith.constant 3 : index
    %c0_64 = arith.constant 0 : index
    %c0_65 = arith.constant 0 : index
    %86 = vector.load %arg7[%c3_63, %c0_64, %c0_65] : memref<4x1x128xf32, #tpu.memory_space<vmem>>, vector<1x1x128xf32>
    %87 = vector.shape_cast %86 : vector<1x1x128xf32> to vector<1x128xf32>
    %88 = vector.broadcast %87 : vector<1x128xf32> to vector<32x128xf32>
    %89 = arith.addf %85, %88 : vector<32x128xf32>
    %90 = arith.addf %89, %71 : vector<32x128xf32>
    %cst_66 = arith.constant 0.000000e+00 : f32
    %91 = vector.broadcast %cst_66 : f32 to vector<32x128xf32>
    %92 = arith.maximumf %90, %91 : vector<32x128xf32>
    %93 = arith.truncf %92 : vector<32x128xf32> to vector<32x128xbf16>
    %c0_67 = arith.constant 0 : index
    %c0_68 = arith.constant 0 : index
    %94 = vector.load %arg8[%c0_67, %c0_68] : memref<128x4xbf16, #tpu.memory_space<vmem>>, vector<128x4xbf16>
    %cst_69 = arith.constant dense<0.000000e+00> : vector<32x4xf32>
    %95 = tpu.matmul %93, %94, %cst_69 {dimension_numbers = #tpu.dot_dimension_numbers<[1], [0], [0], [1], [0, 0, 1, 1], [], []>} : vector<32x128xbf16>, vector<128x4xbf16>, vector<32x4xf32> -> vector<32x4xf32>
    %c0_70 = arith.constant 0 : index
    %c0_71 = arith.constant 0 : index
    %96 = vector.load %arg9[%c0_70, %c0_71] : memref<1x4xf32, #tpu.memory_space<vmem>>, vector<1x4xf32>
    %97 = vector.broadcast %96 : vector<1x4xf32> to vector<32x4xf32>
    %98 = arith.addf %95, %97 : vector<32x4xf32>
    %c0_72 = arith.constant 0 : index
    %c0_73 = arith.constant 0 : index
    %99 = vector.load %arg10[%c0_72, %c0_73] : memref<32x4xf32, #tpu.memory_space<vmem>>, vector<32x4xf32>
    tpu.vector_store %arg10[%c0_72, %c0_73], %98 {strides = array<i32>} : memref<32x4xf32, #tpu.memory_space<vmem>>, vector<32x4xf32>,
    return
  }
  func.func @transform_0(%arg0: i32) -> (i32, i32) {
    %c0_i32 = arith.constant 0 : i32
    %c0_i32_0 = arith.constant 0 : i32
    return %arg0, %c0_i32 : i32, i32
  }
  func.func @transform_1(%arg0: i32) -> (i32, i32) {
    %c0_i32 = arith.constant 0 : i32
    %c0_i32_0 = arith.constant 0 : i32
    %c0_i32_1 = arith.constant 0 : i32
    return %c0_i32, %c0_i32_0 : i32, i32
  }
  func.func @transform_2(%arg0: i32) -> (i32, i32) {
    %c0_i32 = arith.constant 0 : i32
    %c0_i32_0 = arith.constant 0 : i32
    %c0_i32_1 = arith.constant 0 : i32
    return %c0_i32, %c0_i32_0 : i32, i32
  }
  func.func @transform_3(%arg0: i32) -> (i32, i32, i32) {
    %c0_i32 = arith.constant 0 : i32
    %c0_i32_0 = arith.constant 0 : i32
    %c0_i32_1 = arith.constant 0 : i32
    %c0_i32_2 = arith.constant 0 : i32
    return %c0_i32, %c0_i32_0, %c0_i32_1 : i32, i32, i32
  }
  func.func @transform_4(%arg0: i32) -> (i32, i32, i32) {
    %c0_i32 = arith.constant 0 : i32
    %c0_i32_0 = arith.constant 0 : i32
    %c0_i32_1 = arith.constant 0 : i32
    %c0_i32_2 = arith.constant 0 : i32
    return %c0_i32, %c0_i32_0, %c0_i32_1 : i32, i32, i32
  }
  func.func @transform_5(%arg0: i32) -> (i32, i32, i32) {
    %c0_i32 = arith.constant 0 : i32
    %c0_i32_0 = arith.constant 0 : i32
    %c0_i32_1 = arith.constant 0 : i32
    %c0_i32_2 = arith.constant 0 : i32
    return %c0_i32, %c0_i32_0, %c0_i32_1 : i32, i32, i32
  }
  func.func @transform_6(%arg0: i32) -> (i32, i32, i32) {
    %c0_i32 = arith.constant 0 : i32
    %c0_i32_0 = arith.constant 0 : i32
    %c0_i32_1 = arith.constant 0 : i32
    %c0_i32_2 = arith.constant 0 : i32
    return %c0_i32, %c0_i32_0, %c0_i32_1 : i32, i32, i32
  }
  func.func @transform_7(%arg0: i32) -> (i32, i32) {
    %c0_i32 = arith.constant 0 : i32
    %c0_i32_0 = arith.constant 0 : i32
    %c0_i32_1 = arith.constant 0 : i32
    return %c0_i32, %c0_i32_0 : i32, i32
  }
  func.func @transform_8(%arg0: i32) -> (i32, i32) {
    %c0_i32 = arith.constant 0 : i32
    %c0_i32_0 = arith.constant 0 : i32
    %c0_i32_1 = arith.constant 0 : i32
    return %c0_i32, %c0_i32_0 : i32, i32
  }
  func.func @transform_9(%arg0: i32) -> (i32, i32) {
    %c0_i32 = arith.constant 0 : i32
    %c0_i32_0 = arith.constant 0 : i32
    return %arg0, %c0_i32 : i32, i32
  }
}

</mosaic_0001>

<bundles_post_ra>
// kernel: tpu_custom_call.1
= control target key start
LH: loop header
LB: loop body
LE: loop exit
PB: predicated region body
PF: predicated region fallthrough
CT: control target
= control target key end

     0   :  { %14 = vsyncpa [#allocation3], 0  ;;  %s3053_s0 = inlined_call_operand.vmem [shape: f32[64,12], index: 0, kind: input, shape index: {}]   ;;  %s3054_s1 = inlined_call_operand.vmem [shape: bf16[12,128], index: 1, kind: input, shape index: {}]   ;;  %s3055_s2 = inlined_call_operand.vmem [shape: f32[1,128], index: 2, kind: input, shape index: {}]   ;;  %s3056_s3 = inlined_call_operand.hbm [shape: bf16[4,128,256], index: 3, kind: input, shape index: {}]   ;;  %s3057_s4 = inlined_call_operand.vmem [shape: f32[4,1,256], index: 4, kind: input, shape index: {}]   ;;  %s3058_s5 = inlined_call_operand.hbm [shape: bf16[4,256,128], index: 5, kind: input, shape index: {}]   ;;  %s3059_s6 = inlined_call_operand.vmem [shape: f32[4,1,128], index: 6, kind: input, shape index: {}]   ;;  %s3060_s7 = inlined_call_operand.vmem [shape: bf16[128,4], index: 7, kind: input, shape index: {}]   ;;  %s3061_s8 = inlined_call_operand.vmem [shape: f32[1,4], index: 8, kind: input, shape index: {}]   ;;  %s3062_s9 = inlined_call_operand.vmem [shape: f32[64,4], index: 9, kind: output, shape index: {}]  }
   0x1   :  { %15 = vsyncpa [#allocation5], 0  ;;  %s2821_s30 = smov 0  }
   0x2 LB: > { %s263_s12 = sshll.u32 %s3056_s3, 4  ;;  %s1934_s13 = sadd.s32 4294967295, %s2763_s30   ;;  %s2763_s30 = sphi %s2821_s30, %s21_s30   ;;  %s264_s12 = int_to_ptr.hbm [resolvable:$true] %s263_s12 }
   0x3   : > { %p1936_p0 = scmp.ge.s32.totalorder %s2763_s30, 1  ;;  %p246_p1 = scmp.lt.s32.totalorder %s2763_s30, 3 }
   0x4   : > { %p2832_p2 = scmp.eq.s32.totalorder %s1934_s13, 0  ;;  %s2765_s16 = smov [#allocation2]  }
   0x5   : > { %p2836_p3 = pnand %p1936_p0, %p246_p1  ;;  %s265_s17 = sshll.u32 %s2765_s16, 4  ;;  %s266_s17 = int_to_ptr.vmem [resolvable:$true] %s265_s17 }
   0x6   : > { %s280_s20 = sshll.u32 %s3058_s5, 4  ;;  %s2766_s21 = smov [#allocation4]   ;;  %s281_s20 = int_to_ptr.hbm [resolvable:$true] %s280_s20 }
   0x7   : > { %p2658_p4 = pneg %p2836_p3  ;;  %s282_s22 = sshll.u32 %s2766_s21, 4  ;;  %s283_s22 = int_to_ptr.vmem [resolvable:$true] %s282_s22 }
   0x8   : > { %s2767_s23 = smov 128   ;;  %s2768_s24 = smov 8  }
   0x9   : > { %p2659_p5 = pnand %p2832_p2, %p2658_p4  ;;  %s2769_s25 = smov 64  }
   0xa   : > { %s2770_s26 = smov 4   ;;  %316 = sbr.rel (%p2836_p3) target bundleno = 1486 (0x5ce), region = 56 }
   0xb   : > { %2661 = dma.hbm_to_vmem [thread:$0]  (!%p2659_p5), %s264_s12, 8192, %s266_s17, [#allocation3], %s2767_s23, %s2767_s23, %s2768_s24  }
   0xc   : > { %2664 = dma.hbm_to_vmem [thread:$0]  (!%p2659_p5), %s281_s20, 8192, %s283_s22, [#allocation5], %s2769_s25, %s2769_s25, %s2770_s26  }
   0xf   : > { %2754 = dma.done.wait (%p2832_p2), [#allocation3], 8192  }
  0x10   : > { %2756 = vsyncadd (%p2832_p2), [#allocation3], 4294959104 }
  0x11   : > { %2758 = dma.done.wait (%p2832_p2), [#allocation5], 8192  }
  0x12   : > { %2760 = vsyncadd (%p2832_p2), [#allocation5], 4294959104  ;;  %s1943_s27 = sshll.u32 %s1934_s13, 2  ;;  %v1949_v0 = vld [vmem:[%s3054_s1] sm:$0xf]  ;;  %vm395_vm0 = vcmask 1045504  }
  0x13   : > { %p359_p6 = scmp.lt.s32.totalorder %s1943_s27, 7  ;;  %v2505_v1 = vld [vmem:[%s3054_s1] sm:$0x30]  ;;  %v2011_v5 = vld [vmem:[#allocation2 + $0x70] sm:$0xf]  ;;  %vm388_vm1 = vcmask 97280  }
  0x14   : > { %v1950_v3 = vor.u32 %v2505_v1, %v1949_v0  ;;  %v2521_v6 = vld [vmem:[#allocation2 + $0x74] sm:$0xf0]  ;;  %v2520_v7 = vld [vmem:[#allocation2 + $0x74] sm:$0xf]  ;;  %v2013_v11 = vld [vmem:[#allocation2 + $0x78] sm:$0xf0] }
  0x15   : > { %s3066_s27 = smov (!%p359_p6, %s1943_s27), 7  ;;  %v2012_v10 = vor.u32 %v2521_v6, %v2011_v5  ;;  %v2003_v12 = vld [vmem:[#allocation2 + $0x60] sm:$0xf]  ;;  %v2016_v13 = vor.u32 %v2520_v7, %v2013_v11  ;;  %v2519_v14 = vld [vmem:[#allocation2 + $0x64] sm:$0xf0]  ;;  %v2529_v58 = vld [vmem:[#allocation4 + $0x38] sm:$0xff] }
  0x16   : > { %s1944_s28 = sshll.u32 %s3066_s27, 3  ;;  %v397_v8 = vsel %vm395_vm0, %v1950_v3, 0  ;;  %v2518_v15 = vld [vmem:[#allocation2 + $0x64] sm:$0xf]  ;;  %v2005_v16 = vld [vmem:[#allocation2 + $0x68] sm:$0xf0]  ;;  %v2004_v17 = vor.u32 %v2519_v14, %v2003_v12  ;;  %708 = vmatpush.bf16.msra.mxu3 %v2529_v58 }
  0x17   : > { %s2865_s11 = scalar_lea.vmem %s3053_s0, %s1944_s28  ;;  %406 = vmatpush.bf16.msra.mxu0 %v397_v8  ;;  %526 = vmatpush.bf16.msra.mxu1 %v2012_v10  ;;  %v2008_v18 = vor.u32 %v2518_v15, %v2005_v16  ;;  %v1995_v19 = vld [vmem:[#allocation2 + $0x50] sm:$0xf]  ;;  %v2517_v20 = vld [vmem:[#allocation2 + $0x54] sm:$0xf0]  ;;  %v2516_v21 = vld [vmem:[#allocation2 + $0x54] sm:$0xf]  ;;  %s368_s18 = scalar_lea.vmem %s3062_s9, %s1944_s28 }
  0x18   : > { %v371_v2 = vld [vmem:[%s2865_s11] sm:$0xff]  ;;  %v372_v4 = vld [vmem:[%s2865_s11 + $0x8] sm:$0xff]  ;;  %545 = vmatpush.bf16.msra.mxu2 %v2016_v13  ;;  %v1997_v22 = vld [vmem:[#allocation2 + $0x58] sm:$0xf0]  ;;  %v1996_v23 = vor.u32 %v2517_v20, %v1995_v19  ;;  %vm1851_vm2 = vcmask 31744  }
  0x19   : > { %v375_v9 = vpack.c.bf16 %v372_v4, %v371_v2  ;;  %v2000_v24 = vor.u32 %v2516_v21, %v1997_v22  ;;  %v1987_v25 = vld [vmem:[#allocation2 + $0x40] sm:$0xf]  ;;  %v2515_v26 = vld [vmem:[#allocation2 + $0x44] sm:$0xf0]  ;;  %v2514_v27 = vld [vmem:[#allocation2 + $0x44] sm:$0xf] }
  0x1a   : > { %v1989_v28 = vld [vmem:[#allocation2 + $0x48] sm:$0xf0]  ;;  %v1988_v29 = vor.u32 %v2515_v26, %v1987_v25  ;;  %v373_v31 = vld [vmem:[%s2865_s11 + $0x10] sm:$0xff]  ;;  %v374_v32 = vld [vmem:[%s2865_s11 + $0x18] sm:$0xff] }
  0x1b   : > { %1951 = vmatmul.msk.bf16.vlgmr.msra.gmra.mxu0 %vm388_vm1, %v375_v9  ;;  %527 = vmatpush.bf16.msra.mxu1 %v2004_v17  ;;  %v1992_v30 = vor.u32 %v2514_v27, %v1989_v28  ;;  %v376_v33 = vpack.c.bf16 %v374_v32, %v373_v31  ;;  %v1979_v34 = vld [vmem:[#allocation2 + $0x30] sm:$0xf]  ;;  %v2513_v35 = vld [vmem:[#allocation2 + $0x34] sm:$0xf0]  ;;  %v2512_v36 = vld [vmem:[#allocation2 + $0x34] sm:$0xf] }
  0x1c   : > { %546 = vmatpush.bf16.msra.mxu2 %v2008_v18  ;;  %v1980_v37 = vor.u32 %v2513_v35, %v1979_v34  ;;  %v1981_v38 = vld [vmem:[#allocation2 + $0x38] sm:$0xf0]  ;;  %v1971_v40 = vld [vmem:[#allocation2 + $0x20] sm:$0xf]  ;;  %v2511_v41 = vld [vmem:[#allocation2 + $0x24] sm:$0xf0] }
  0x1d   : > { %v1984_v39 = vor.u32 %v2512_v36, %v1981_v38  ;;  %v2510_v42 = vld [vmem:[#allocation2 + $0x24] sm:$0xf]  ;;  %v1972_v43 = vor.u32 %v2511_v41, %v1971_v40  ;;  %v1973_v44 = vld [vmem:[#allocation2 + $0x28] sm:$0xf0]  ;;  %v1963_v46 = vld [vmem:[#allocation2 + $0x10] sm:$0xf] }
  0x1e   : > { %v1976_v45 = vor.u32 %v2510_v42, %v1973_v44  ;;  %v2509_v47 = vld [vmem:[#allocation2 + $0x14] sm:$0xf0]  ;;  %v2508_v48 = vld [vmem:[#allocation2 + $0x14] sm:$0xf]  ;;  %v1965_v50 = vld [vmem:[#allocation2 + $0x18] sm:$0xf0] }
  0x1f   : > { %528 = vmatpush.bf16.msra.mxu1 %v1996_v23  ;;  %v1964_v49 = vor.u32 %v2509_v47, %v1963_v46  ;;  %v1968_v51 = vor.u32 %v2508_v48, %v1965_v50  ;;  %v1955_v52 = vld [vmem:[#allocation2] sm:$0xf]  ;;  %v2507_v53 = vld [vmem:[#allocation2 + $0x4] sm:$0xf0]  ;;  %v2506_v54 = vld [vmem:[#allocation2 + $0x4] sm:$0xf] }
  0x20   : > { %547 = vmatpush.bf16.msra.mxu2 %v2000_v24  ;;  %v1956_v55 = vor.u32 %v2507_v53, %v1955_v52  ;;  %v1957_v56 = vld [vmem:[#allocation2 + $0x8] sm:$0xf0]  ;;  %v2537_v59 = vld [vmem:[#allocation4 + $0x78] sm:$0xff]  ;;  %v2528_v61 = vld [vmem:[#allocation4 + $0x30] sm:$0xff] }
  0x21   : > { %v1960_v57 = vor.u32 %v2506_v54, %v1957_v56  ;;  %727 = vmatpush.bf16.msrb.mxu0 %v2537_v59  ;;  %v2536_v62 = vld [vmem:[#allocation4 + $0x70] sm:$0xff]  ;;  %v2683_v63 = vld [vmem:[%s3055_s2] ss:$0 sm:$0xff]  ;;  %709 = vmatpush.bf16.msra.mxu3 %v2528_v61  ;;  %v2527_v0 = vld [vmem:[#allocation4 + $0x28] sm:$0xff] }
  0x22   : > { %v2535_v1 = vld [vmem:[#allocation4 + $0x68] sm:$0xff]  ;;  %v2526_v5 = vld [vmem:[#allocation4 + $0x20] sm:$0xff]  ;;  %v2525_v16 = vld [vmem:[#allocation4 + $0x18] sm:$0xff] }
  0x23   : > { %529 = vmatpush.bf16.msra.mxu1 %v1988_v29  ;;  %v2534_v17 = vld [vmem:[#allocation4 + $0x60] sm:$0xff]  ;;  %v2524_v18 = vld [vmem:[#allocation4 + $0x10] sm:$0xff]  ;;  %v2533_v19 = vld [vmem:[#allocation4 + $0x58] sm:$0xff] }
  0x24   : > { %548 = vmatpush.bf16.msra.mxu2 %v1992_v30  ;;  %v2523_v20 = vld [vmem:[#allocation4 + $0x8] sm:$0xff]  ;;  %v2532_v21 = vld [vmem:[#allocation4 + $0x50] sm:$0xff]  ;;  %v2522_v22 = vld [vmem:[#allocation4] sm:$0xff] }
  0x25   : > { %728 = vmatpush.bf16.msrb.mxu0 %v2536_v62  ;;  %710 = vmatpush.bf16.msra.mxu3 %v2527_v0  ;;  %v2531_v23 = vld [vmem:[#allocation4 + $0x48] sm:$0xff]  ;;  %v2530_v24 = vld [vmem:[#allocation4 + $0x40] sm:$0xff]  ;;  %v2140_v28 = vld [vmem:[#allocation2 + $0xf0] sm:$0xf] }
  0x26   : > { %v440_v25 = vld [vmem:[%s3057_s4] sm:$0x3]  ;;  %v2553_v29 = vld [vmem:[#allocation2 + $0xf4] sm:$0xf0]  ;;  %v2552_v30 = vld [vmem:[#allocation2 + $0xf4] sm:$0xf] }
  0x27   : > { %530 = vmatpush.bf16.msra.mxu1 %v1980_v37  ;;  %v442_v27 = vperm.slane %v440_v25, 0  ;;  %v2141_v32 = vor.u32 %v2553_v29, %v2140_v28  ;;  %v2132_v34 = vld [vmem:[#allocation2 + $0xe0] sm:$0xf]  ;;  %v2551_v35 = vld [vmem:[#allocation2 + $0xe4] sm:$0xf0]  ;;  %v443_v42 = vperm.slane %v440_v25, 1 }
  0x28   : > { %549 = vmatpush.bf16.msra.mxu2 %v1984_v39  ;;  %v2550_v38 = vld [vmem:[#allocation2 + $0xe4] sm:$0xf]  ;;  %v2134_v39 = vld [vmem:[#allocation2 + $0xe8] sm:$0xf0]  ;;  %v2133_v41 = vor.u32 %v2551_v35, %v2132_v34  ;;  %v2549_v46 = vld [vmem:[#allocation2 + $0xd4] sm:$0xf0] }
  0x29   : > { %729 = vmatpush.bf16.msrb.mxu0 %v2535_v1  ;;  %711 = vmatpush.bf16.msra.mxu3 %v2526_v5  ;;  %v2137_v44 = vor.u32 %v2550_v38, %v2134_v39  ;;  %v2548_v47 = vld [vmem:[#allocation2 + $0xd4] sm:$0xf]  ;;  %v2126_v48 = vld [vmem:[#allocation2 + $0xd8] sm:$0xf0]  ;;  %v2547_v56 = vld [vmem:[#allocation2 + $0xc4] sm:$0xf0] }
  0x2a   : > { %v2129_v54 = vor.u32 %v2548_v47, %v2126_v48  ;;  %v2545_v25 = vld [vmem:[#allocation2 + $0xb4] sm:$0xf0]  ;;  %v2102_v34 = vld [vmem:[#allocation2 + $0xa8] sm:$0xf0]  ;;  %v2540_v38 = vld [vmem:[#allocation2 + $0x94] sm:$0xf] }
  0x2b   : > { %1952 = vmatmul.msk.bf16.gmra.mxu0 %vm388_vm1, %v376_v33  ;;  %531 = vmatpush.bf16.msra.mxu1 %v1972_v43  ;;  %v2142_v33 = vld [vmem:[#allocation2 + $0xf8] sm:$0xf0]  ;;  %v2684_v48 = vld [vmem:[%s3059_s6] ss:$0 sm:$0xff] }
  0x2c   : > { %550 = vmatpush.bf16.msra.mxu2 %v1976_v45  ;;  %v2145_v37 = vor.u32 %v2552_v30, %v2142_v33  ;;  %v2124_v45 = vld [vmem:[#allocation2 + $0xd0] sm:$0xf]  ;;  %v2100_v30 = vld [vmem:[#allocation2 + $0xa0] sm:$0xf] }
  0x2d   : > { %712 = vmatpush.bf16.msra.mxu3 %v2525_v16  ;;  %730 = vmatpush.bf16.msrb.mxu0 %v2534_v17 }
  0x2f   : > { %532 = vmatpush.bf16.msra.mxu1 %v1964_v49 }
  0x30   : > { %551 = vmatpush.bf16.msra.mxu2 %v1968_v51  ;;  %v2125_v51 = vor.u32 %v2549_v46, %v2124_v45  ;;  %v2086_v46 = vld [vmem:[#allocation2 + $0x88] sm:$0xf0] }
  0x31   : > { %713 = vmatpush.bf16.msra.mxu3 %v2524_v18  ;;  %731 = vmatpush.bf16.msrb.mxu0 %v2533_v19 }
  0x33   : > { %533 = vmatpush.bf16.msra.mxu1 %v1956_v55  ;;  %v2116_v55 = vld [vmem:[#allocation2 + $0xc0] sm:$0xf] }
  0x34   : > { %552 = vmatpush.bf16.msra.mxu2 %v1960_v57 }
  0x35   : > { %714 = vmatpush.bf16.msra.mxu3 %v2523_v20  ;;  %732 = vmatpush.bf16.msrb.mxu0 %v2532_v21  ;;  %v2546_v21 = vld [vmem:[#allocation2 + $0xc4] sm:$0xf] }
  0x37   : > { %860 = vmatpush.bf16.msrb.mxu1 %v2141_v32  ;;  %v2542_v32 = vld [vmem:[#allocation2 + $0xa4] sm:$0xf] }
  0x38   : > { %879 = vmatpush.bf16.msrb.mxu2 %v2145_v37  ;;  %v2105_v35 = vor.u32 %v2542_v32, %v2102_v34  ;;  %v2541_v37 = vld [vmem:[#allocation2 + $0x94] sm:$0xf0]  ;;  %v2584_v32 = vld [vmem:[#allocation2 + $0x174] sm:$0xf] }
  0x39   : > { %715 = vmatpush.bf16.msra.mxu3 %v2522_v22  ;;  %733 = vmatpush.bf16.msrb.mxu0 %v2531_v23  ;;  %v2118_v22 = vld [vmem:[#allocation2 + $0xc8] sm:$0xf0] }
  0x3a   : > { %v2121_v23 = vor.u32 %v2546_v21, %v2118_v22 }
  0x3b   : > { %861 = vmatpush.bf16.msrb.mxu1 %v2133_v41 }
  0x3c   : > { %880 = vmatpush.bf16.msrb.mxu2 %v2137_v44  ;;  %v2538_v44 = vld [vmem:[#allocation2 + $0x84] sm:$0xf] }
  0x3d   : > { %734 = vmatpush.bf16.msrb.mxu0 %v2530_v24  ;;  %v2108_v24 = vld [vmem:[#allocation2 + $0xb0] sm:$0xf]  ;;  %v2089_v47 = vor.u32 %v2538_v44, %v2086_v46 }
  0x3e   : > { %v2109_v28 = vor.u32 %v2545_v25, %v2108_v24  ;;  %v2554_v24 = vld [vmem:[#allocation4 + $0x80] sm:$0xff]  ;;  %v2563_v25 = vld [vmem:[#allocation4 + $0xc8] sm:$0xff] }
  0x3f   : > { %862 = vmatpush.bf16.msrb.mxu1 %v2125_v51 }
  0x40   : > { %881 = vmatpush.bf16.msrb.mxu2 %v2129_v54  ;;  %v2560_v54 = vld [vmem:[#allocation4 + $0xb0] sm:$0xff] }
  0x44   : > { %882 = vmatpush.bf16.msrb.mxu2 %v2121_v23  ;;  %v2566_v23 = vld [vmem:[#allocation4 + $0xe0] sm:$0xff] }
  0x98   : > { %v408_v60 = vpop.f32.mrf.mxu0 }
  0x99   : > { %v2882_v2 = vadd.f32 %v2683_v63, %v408_v60  ;;  %v2117_v60 = vor.u32 %v2547_v56, %v2116_v55  ;;  %v2568_v55 = vld [vmem:[#allocation4 + $0xf0] sm:$0xff] }
  0x9b   : > { %v418_v6 = vmax.f32 %v2882_v2, 0.0  ;;  %863 = vmatpush.bf16.msrb.mxu1 %v2117_v60  ;;  %v2559_v60 = vld [vmem:[#allocation4 + $0xa8] sm:$0xff] }
  0x9f   : > { %864 = vmatpush.bf16.msrb.mxu1 %v2109_v28  ;;  %v2081_v28 = vld [vmem:[%s3057_s4 + $0x2] sm:$0x3] }
  0xa0   : > { %v410_v3 = vpop.f32.mrf.mxu0  ;;  %v777_v44 = vperm.slane %v2081_v28, 1 }
  0xa1   : > { %v2884_v4 = vadd.f32 %v2683_v63, %v410_v3 }
  0xa3   : > { %v419_v7 = vmax.f32 %v2884_v4, 0.0 }
  0xa5   : > { %v422_v8 = vpack.c.bf16 %v419_v7, %v418_v6 }
  0xa7   : > { %534 = vmatmul.bf16.vlgmr.msra.gmra.mxu1 %v422_v8  ;;  %553 = vmatmul.bf16.vlgmr.msra.gmra.mxu2 %v422_v8 }
  0xa8   : > { %v413_v9 = vpop.f32.mrf.mxu0 }
  0xa9   : > { %v2892_v10 = vadd.f32 %v2683_v63, %v413_v9 }
  0xab   : > { %v420_v13 = vmax.f32 %v2892_v10, 0.0  ;;  %v2556_v10 = vld [vmem:[#allocation4 + $0x90] sm:$0xff] }
  0xb0   : > { %v415_v11 = vpop.f32.mrf.mxu0 }
  0xb1   : > { %v2894_v12 = vadd.f32 %v2683_v63, %v415_v11 }
  0xb3   : > { %v421_v14 = vmax.f32 %v2894_v12, 0.0  ;;  %v2555_v12 = vld [vmem:[#allocation4 + $0x88] sm:$0xff] }
  0xb5   : > { %v423_v15 = vpack.c.bf16 %v421_v14, %v420_v13 }
  0xb7   : > { %539 = vmatmul.bf16.gmra.mxu1 %v423_v15  ;;  %558 = vmatmul.bf16.gmra.mxu2 %v423_v15 }
 0x124   : > { %v535_v26 = vpop.f32.mrf.mxu1 }
 0x125   : > { %v536_v36 = vadd.f32 %v535_v26, %v442_v27  ;;  %v2544_v26 = vld [vmem:[#allocation2 + $0xb4] sm:$0xf] }
 0x127   : > { %v564_v49 = vmax.f32 %v536_v36, 0.0  ;;  %v2092_v36 = vld [vmem:[#allocation2 + $0x90] sm:$0xf] }
 0x128   : > { %v2093_v39 = vor.u32 %v2541_v37, %v2092_v36  ;;  %v2262_v36 = vld [vmem:[#allocation2 + $0x160] sm:$0xf]  ;;  %v2583_v37 = vld [vmem:[#allocation2 + $0x164] sm:$0xf0] }
 0x12a   : > { %v554_v31 = vpop.f32.mrf.mxu2 }
 0x12b   : > { %v555_v52 = vadd.f32 %v554_v31, %v443_v42  ;;  %v2543_v31 = vld [vmem:[#allocation2 + $0xa4] sm:$0xf0] }
 0x12c   : > { %v537_v40 = vpop.f32.mrf.mxu1  ;;  %v2101_v33 = vor.u32 %v2543_v31, %v2100_v30  ;;  %v2270_v30 = vld [vmem:[#allocation2 + $0x170] sm:$0xf]  ;;  %v2585_v31 = vld [vmem:[#allocation2 + $0x174] sm:$0xf0] }
 0x12d   : > { %v538_v43 = vadd.f32 %v537_v40, %v442_v27  ;;  %v565_v61 = vmax.f32 %v555_v52, 0.0  ;;  %v2094_v40 = vld [vmem:[#allocation2 + $0x98] sm:$0xf0]  ;;  %v2271_v34 = vor.u32 %v2585_v31, %v2270_v30 }
 0x12e   : > { %865 = vmatpush.bf16.msrb.mxu1 %v2101_v33  ;;  %v2097_v41 = vor.u32 %v2540_v38, %v2094_v40  ;;  %v2561_v52 = vld [vmem:[#allocation4 + $0xb8] sm:$0xff]  ;;  %v2582_v40 = vld [vmem:[#allocation2 + $0x164] sm:$0xf] }
 0x12f   : > { %v566_v50 = vmax.f32 %v538_v43, 0.0  ;;  %v2539_v43 = vld [vmem:[#allocation2 + $0x84] sm:$0xf0]  ;;  %1044 = vmatpush.bf16.msrb.mxu3 %v2561_v52 }
 0x131   : > { %v572_v53 = vpack.c.bf16 %v566_v50, %v564_v49 }
 0x132   : > { %v556_v57 = vpop.f32.mrf.mxu2  ;;  %866 = vmatpush.bf16.msrb.mxu1 %v2093_v39 }
 0x133   : > { %v557_v58 = vadd.f32 %v556_v57, %v443_v42  ;;  %716 = vmatmul.bf16.vlgmr.msra.gmra.mxu3 %v572_v53  ;;  %v2569_v53 = vld [vmem:[#allocation4 + $0xf8] sm:$0xff] }
 0x134   : > { %v540_v59 = vpop.f32.mrf.mxu1  ;;  %1063 = vmatpush.bf16.msra.mxu0 %v2569_v53  ;;  %1045 = vmatpush.bf16.msrb.mxu3 %v2560_v54 }
 0x135   : > { %v567_v62 = vmax.f32 %v557_v58, 0.0  ;;  %v541_v1 = vadd.f32 %v540_v59, %v442_v27 }
 0x137   : > { %v573_v63 = vpack.c.bf16 %v567_v62, %v565_v61  ;;  %v568_v8 = vmax.f32 %v541_v1, 0.0  ;;  %v2567_v61 = vld [vmem:[#allocation4 + $0xe8] sm:$0xff]  ;;  %v2558_v1 = vld [vmem:[#allocation4 + $0xa0] sm:$0xff] }
 0x138   : > { %1064 = vmatpush.bf16.msra.mxu0 %v2568_v55  ;;  %1046 = vmatpush.bf16.msrb.mxu3 %v2559_v60 }
 0x139   : > { %735 = vmatmul.bf16.vlgmr.msrb.gmra.mxu0 %v573_v63 }
 0x13a   : > { %v559_v0 = vpop.f32.mrf.mxu2 }
 0x13b   : > { %v560_v11 = vadd.f32 %v559_v0, %v443_v42 }
 0x13c   : > { %v542_v3 = vpop.f32.mrf.mxu1  ;;  %1065 = vmatpush.bf16.msra.mxu0 %v2567_v61  ;;  %1047 = vmatpush.bf16.msrb.mxu3 %v2558_v1 }
 0x13d   : > { %v543_v5 = vadd.f32 %v542_v3, %v442_v27  ;;  %v569_v18 = vmax.f32 %v560_v11, 0.0  ;;  %v2110_v27 = vld [vmem:[#allocation2 + $0xb8] sm:$0xf0] }
 0x13e   : > { %v2113_v29 = vor.u32 %v2544_v26, %v2110_v27  ;;  %v2562_v26 = vld [vmem:[#allocation4 + $0xc0] sm:$0xff] }
 0x13f   : > { %v570_v9 = vmax.f32 %v543_v5, 0.0 }
 0x140   : > { %883 = vmatpush.bf16.msrb.mxu2 %v2113_v29  ;;  %1066 = vmatpush.bf16.msra.mxu0 %v2566_v23  ;;  %v776_v29 = vperm.slane %v2081_v28, 0  ;;  %v2577_v28 = vld [vmem:[#allocation2 + $0x134] sm:$0xf0] }
 0x141   : > { %v574_v15 = vpack.c.bf16 %v570_v9, %v568_v8 }
 0x142   : > { %v561_v16 = vpop.f32.mrf.mxu2 }
 0x143   : > { %v562_v17 = vadd.f32 %v561_v16, %v443_v42  ;;  %721 = vmatmul.bf16.gmra.mxu3 %v574_v15  ;;  %v2084_v42 = vld [vmem:[#allocation2 + $0x80] sm:$0xf] }
 0x144   : > { %884 = vmatpush.bf16.msrb.mxu2 %v2105_v35  ;;  %v2085_v45 = vor.u32 %v2539_v43, %v2084_v42  ;;  %v2272_v35 = vld [vmem:[#allocation2 + $0x178] sm:$0xf0]  ;;  %v2263_v43 = vor.u32 %v2583_v37, %v2262_v36  ;;  %v2232_v36 = vld [vmem:[#allocation2 + $0x128] sm:$0xf0] }
 0x145   : > { %v571_v19 = vmax.f32 %v562_v17, 0.0  ;;  %v2275_v39 = vor.u32 %v2584_v32, %v2272_v35  ;;  %v2230_v32 = vld [vmem:[#allocation2 + $0x120] sm:$0xf] }
 0x146   : > { %867 = vmatpush.bf16.msrb.mxu1 %v2085_v45 }
 0x147   : > { %v575_v20 = vpack.c.bf16 %v571_v19, %v569_v18 }
 0x148   : > { %885 = vmatpush.bf16.msrb.mxu2 %v2097_v41  ;;  %v2264_v41 = vld [vmem:[#allocation2 + $0x168] sm:$0xf0] }
 0x149   : > { %740 = vmatmul.bf16.gmra.mxu0 %v575_v20  ;;  %v2267_v46 = vor.u32 %v2582_v40, %v2264_v41  ;;  %v2572_v40 = vld [vmem:[#allocation2 + $0x114] sm:$0xf] }
 0x14a   : > { %1196 = vmatpush.bf16.msra.mxu1 %v2271_v34  ;;  %v2574_v34 = vld [vmem:[#allocation2 + $0x124] sm:$0xf] }
 0x14b   : > { %v2235_v37 = vor.u32 %v2574_v34, %v2232_v36  ;;  %v2616_v34 = vld [vmem:[#allocation2 + $0x1f4] sm:$0xf] }
 0x14c   : > { %886 = vmatpush.bf16.msrb.mxu2 %v2089_v47  ;;  %v2254_v47 = vld [vmem:[#allocation2 + $0x150] sm:$0xf] }
 0x14e   : > { %1197 = vmatpush.bf16.msra.mxu1 %v2263_v43 }
 0x150   : > { %1215 = vmatpush.bf16.msra.mxu2 %v2275_v39  ;;  %v2573_v39 = vld [vmem:[#allocation2 + $0x114] sm:$0xf0] }
 0x154   : > { %1216 = vmatpush.bf16.msra.mxu2 %v2267_v46  ;;  %v2570_v46 = vld [vmem:[#allocation2 + $0x104] sm:$0xf] }
 0x1b6   : > { %v717_v49 = vpop.f32.mrf.mxu3  ;;  %v736_v50 = vpop.f32.mrf.mxu0 }
 0x1b7   : > { %v718_v51 = vadd.f32 %v2684_v48, %v717_v49  ;;  %v2580_v49 = vld [vmem:[#allocation2 + $0x154] sm:$0xf] }
 0x1b9   : > { %v737_v56 = vadd.f32 %v736_v50, %v718_v51  ;;  %v2256_v50 = vld [vmem:[#allocation2 + $0x158] sm:$0xf0] }
 0x1bb   : > { %v2910_v62 = vadd.f32 %v737_v56, %v418_v6  ;;  %v2557_v6 = vld [vmem:[#allocation4 + $0x98] sm:$0xff]  ;;  %v2259_v56 = vor.u32 %v2580_v49, %v2256_v50  ;;  %v2685_v50 = vld [vmem:[%s3059_s6 + $0x1] ss:$0 sm:$0xff] }
 0x1bc   : > { %1048 = vmatpush.bf16.msrb.mxu3 %v2557_v6 }
 0x1bd   : > { %v750_v3 = vmax.f32 %v2910_v62, 0.0  ;;  %1217 = vmatpush.bf16.msra.mxu2 %v2259_v56  ;;  %v2592_v56 = vld [vmem:[#allocation4 + $0x130] sm:$0xff] }
 0x1be   : > { %v719_v57 = vpop.f32.mrf.mxu3  ;;  %v738_v58 = vpop.f32.mrf.mxu0 }
 0x1bf   : > { %v720_v59 = vadd.f32 %v2684_v48, %v719_v57  ;;  %v2246_v57 = vld [vmem:[#allocation2 + $0x140] sm:$0xf] }
 0x1c0   : > { %1049 = vmatpush.bf16.msrb.mxu3 %v2556_v10 }
 0x1c1   : > { %v739_v63 = vadd.f32 %v738_v58, %v720_v59  ;;  %v2579_v58 = vld [vmem:[#allocation2 + $0x144] sm:$0xf0] }
 0x1c3   : > { %v2914_v0 = vadd.f32 %v739_v63, %v419_v7  ;;  %v2247_v63 = vor.u32 %v2579_v58, %v2246_v57  ;;  %v2600_v57 = vld [vmem:[#allocation4 + $0x170] sm:$0xff] }
 0x1c4   : > { %1050 = vmatpush.bf16.msrb.mxu3 %v2555_v12 }
 0x1c5   : > { %v751_v5 = vmax.f32 %v2914_v0, 0.0 }
 0x1c6   : > { %v722_v8 = vpop.f32.mrf.mxu3  ;;  %v741_v9 = vpop.f32.mrf.mxu0 }
 0x1c7   : > { %v754_v2 = vpack.c.bf16 %v751_v5, %v750_v3  ;;  %v723_v11 = vadd.f32 %v2684_v48, %v722_v8 }
 0x1c8   : > { %1051 = vmatpush.bf16.msrb.mxu3 %v2554_v24  ;;  %v2248_v24 = vld [vmem:[#allocation2 + $0x148] sm:$0xf0] }
 0x1c9   : > { %868 = vmatmul.bf16.vlgmr.msrb.gmra.mxu1 %v754_v2  ;;  %887 = vmatmul.bf16.vlgmr.msrb.gmra.mxu2 %v754_v2  ;;  %v742_v4 = vadd.f32 %v741_v9, %v723_v11 }
 0x1cb   : > { %v2924_v17 = vadd.f32 %v742_v4, %v420_v13  ;;  %v2565_v13 = vld [vmem:[#allocation4 + $0xd8] sm:$0xff] }
 0x1cc   : > { %1067 = vmatpush.bf16.msra.mxu0 %v2565_v13 }
 0x1cd   : > { %v752_v20 = vmax.f32 %v2924_v17, 0.0  ;;  %v2588_v17 = vld [vmem:[#allocation4 + $0x110] sm:$0xff] }
 0x1ce   : > { %v724_v7 = vpop.f32.mrf.mxu3  ;;  %v743_v16 = vpop.f32.mrf.mxu0 }
 0x1cf   : > { %v725_v15 = vadd.f32 %v2684_v48, %v724_v7  ;;  %v2581_v48 = vld [vmem:[#allocation2 + $0x154] sm:$0xf0] }
 0x1d0   : > { %v2255_v53 = vor.u32 %v2581_v48, %v2254_v47  ;;  %v2216_v48 = vld [vmem:[#allocation2 + $0x108] sm:$0xf0] }
 0x1d1   : > { %v744_v18 = vadd.f32 %v743_v16, %v725_v15  ;;  %v2219_v49 = vor.u32 %v2570_v46, %v2216_v48 }
 0x1d2   : > { %1198 = vmatpush.bf16.msra.mxu1 %v2255_v53 }
 0x1d3   : > { %v2928_v19 = vadd.f32 %v744_v18, %v421_v14  ;;  %v2564_v14 = vld [vmem:[#allocation4 + $0xd0] sm:$0xff] }
 0x1d4   : > { %1068 = vmatpush.bf16.msra.mxu0 %v2564_v14  ;;  %v2578_v14 = vld [vmem:[#allocation2 + $0x144] sm:$0xf] }
 0x1d5   : > { %v753_v21 = vmax.f32 %v2928_v19, 0.0  ;;  %v2587_v19 = vld [vmem:[#allocation4 + $0x108] sm:$0xff] }
 0x1d6   : > { %1199 = vmatpush.bf16.msra.mxu1 %v2247_v63  ;;  %v2591_v63 = vld [vmem:[#allocation4 + $0x128] sm:$0xff] }
 0x1d7   : > { %v755_v22 = vpack.c.bf16 %v753_v21, %v752_v20 }
 0x1d8   : > { %1069 = vmatpush.bf16.msra.mxu0 %v2563_v25  ;;  %v2251_v25 = vor.u32 %v2578_v14, %v2248_v24 }
 0x1d9   : > { %873 = vmatmul.bf16.gmra.mxu1 %v755_v22  ;;  %892 = vmatmul.bf16.gmra.mxu2 %v755_v22 }
 0x1da   : > { %1218 = vmatpush.bf16.msra.mxu2 %v2251_v25  ;;  %v2598_v25 = vld [vmem:[#allocation4 + $0x160] sm:$0xff] }
 0x1dc   : > { %1070 = vmatpush.bf16.msra.mxu0 %v2562_v26  ;;  %v2238_v26 = vld [vmem:[#allocation2 + $0x130] sm:$0xf] }
 0x1dd   : > { %v2239_v30 = vor.u32 %v2577_v28, %v2238_v26  ;;  %v2586_v26 = vld [vmem:[#allocation4 + $0x100] sm:$0xff]  ;;  %v2595_v28 = vld [vmem:[#allocation4 + $0x148] sm:$0xff] }
 0x1df   : > { %1200 = vmatpush.bf16.msra.mxu1 %v2239_v30  ;;  %v2211_v30 = vld [vmem:[%s3057_s4 + $0x4] sm:$0x3] }
 0x1e0   : > { %v1113_v46 = vperm.slane %v2211_v30, 1 }
 0x246   : > { %v869_v27 = vpop.f32.mrf.mxu1 }
 0x247   : > { %v870_v38 = vadd.f32 %v869_v27, %v776_v29  ;;  %v2576_v27 = vld [vmem:[#allocation2 + $0x134] sm:$0xf] }
 0x249   : > { %v898_v51 = vmax.f32 %v870_v38, 0.0  ;;  %v2222_v38 = vld [vmem:[#allocation2 + $0x110] sm:$0xf] }
 0x24a   : > { %v2223_v41 = vor.u32 %v2573_v39, %v2222_v38  ;;  %v2392_v38 = vld [vmem:[#allocation2 + $0x1e0] sm:$0xf]  ;;  %v2615_v39 = vld [vmem:[#allocation2 + $0x1e4] sm:$0xf0] }
 0x24c   : > { %v888_v33 = vpop.f32.mrf.mxu2 }
 0x24d   : > { %v889_v54 = vadd.f32 %v888_v33, %v777_v44  ;;  %v2575_v33 = vld [vmem:[#allocation2 + $0x124] sm:$0xf0] }
 0x24e   : > { %v871_v42 = vpop.f32.mrf.mxu1  ;;  %v2231_v35 = vor.u32 %v2575_v33, %v2230_v32  ;;  %v2400_v32 = vld [vmem:[#allocation2 + $0x1f0] sm:$0xf]  ;;  %v2617_v33 = vld [vmem:[#allocation2 + $0x1f4] sm:$0xf0] }
 0x24f   : > { %v872_v45 = vadd.f32 %v871_v42, %v776_v29  ;;  %v899_v1 = vmax.f32 %v889_v54, 0.0  ;;  %v2224_v42 = vld [vmem:[#allocation2 + $0x118] sm:$0xf0]  ;;  %v2401_v36 = vor.u32 %v2617_v33, %v2400_v32 }
 0x250   : > { %1201 = vmatpush.bf16.msra.mxu1 %v2231_v35  ;;  %v2227_v43 = vor.u32 %v2572_v40, %v2224_v42  ;;  %v2593_v54 = vld [vmem:[#allocation4 + $0x138] sm:$0xff]  ;;  %v2614_v42 = vld [vmem:[#allocation2 + $0x1e4] sm:$0xf] }
 0x251   : > { %v900_v52 = vmax.f32 %v872_v45, 0.0  ;;  %v2571_v45 = vld [vmem:[#allocation2 + $0x104] sm:$0xf0]  ;;  %1380 = vmatpush.bf16.msra.mxu3 %v2593_v54 }
 0x253   : > { %v906_v55 = vpack.c.bf16 %v900_v52, %v898_v51 }
 0x254   : > { %v890_v59 = vpop.f32.mrf.mxu2  ;;  %1202 = vmatpush.bf16.msra.mxu1 %v2223_v41 }
 0x255   : > { %v891_v60 = vadd.f32 %v890_v59, %v777_v44  ;;  %1052 = vmatmul.bf16.vlgmr.msrb.gmra.mxu3 %v906_v55  ;;  %v2601_v55 = vld [vmem:[#allocation4 + $0x178] sm:$0xff] }
 0x256   : > { %v874_v61 = vpop.f32.mrf.mxu1  ;;  %1399 = vmatpush.bf16.msrb.mxu0 %v2601_v55  ;;  %1381 = vmatpush.bf16.msra.mxu3 %v2592_v56 }
 0x257   : > { %v901_v8 = vmax.f32 %v891_v60, 0.0  ;;  %v875_v6 = vadd.f32 %v874_v61, %v776_v29 }
 0x259   : > { %v907_v9 = vpack.c.bf16 %v901_v8, %v899_v1  ;;  %v902_v7 = vmax.f32 %v875_v6, 0.0  ;;  %v2599_v1 = vld [vmem:[#allocation4 + $0x168] sm:$0xff]  ;;  %v2590_v6 = vld [vmem:[#allocation4 + $0x120] sm:$0xff] }
 0x25a   : > { %1400 = vmatpush.bf16.msrb.mxu0 %v2600_v57  ;;  %1382 = vmatpush.bf16.msra.mxu3 %v2591_v63 }
 0x25b   : > { %1071 = vmatmul.bf16.vlgmr.msra.gmra.mxu0 %v907_v9 }
 0x25c   : > { %v893_v2 = vpop.f32.mrf.mxu2 }
 0x25d   : > { %v894_v16 = vadd.f32 %v893_v2, %v777_v44 }
 0x25e   : > { %v876_v11 = vpop.f32.mrf.mxu1  ;;  %1401 = vmatpush.bf16.msrb.mxu0 %v2599_v1  ;;  %1383 = vmatpush.bf16.msra.mxu3 %v2590_v6 }
 0x25f   : > { %v877_v4 = vadd.f32 %v876_v11, %v776_v29  ;;  %v903_v10 = vmax.f32 %v894_v16, 0.0  ;;  %v2240_v29 = vld [vmem:[#allocation2 + $0x138] sm:$0xf0] }
 0x260   : > { %v2243_v31 = vor.u32 %v2576_v27, %v2240_v29  ;;  %v2594_v27 = vld [vmem:[#allocation4 + $0x140] sm:$0xff] }
 0x261   : > { %v904_v15 = vmax.f32 %v877_v4, 0.0 }
 0x262   : > { %1219 = vmatpush.bf16.msra.mxu2 %v2243_v31  ;;  %1402 = vmatpush.bf16.msrb.mxu0 %v2598_v25  ;;  %v1112_v31 = vperm.slane %v2211_v30, 0  ;;  %v2609_v30 = vld [vmem:[#allocation2 + $0x1b4] sm:$0xf0] }
 0x263   : > { %v908_v18 = vpack.c.bf16 %v904_v15, %v902_v7 }
 0x264   : > { %v895_v22 = vpop.f32.mrf.mxu2 }
 0x265   : > { %v896_v23 = vadd.f32 %v895_v22, %v777_v44  ;;  %1057 = vmatmul.bf16.gmra.mxu3 %v908_v18  ;;  %v2214_v44 = vld [vmem:[#allocation2 + $0x100] sm:$0xf] }
 0x266   : > { %1220 = vmatpush.bf16.msra.mxu2 %v2235_v37  ;;  %v2215_v47 = vor.u32 %v2571_v45, %v2214_v44  ;;  %v2402_v37 = vld [vmem:[#allocation2 + $0x1f8] sm:$0xf0]  ;;  %v2393_v45 = vor.u32 %v2615_v39, %v2392_v38  ;;  %v2362_v38 = vld [vmem:[#allocation2 + $0x1a8] sm:$0xf0] }
 0x267   : > { %v905_v13 = vmax.f32 %v896_v23, 0.0  ;;  %v2405_v41 = vor.u32 %v2616_v34, %v2402_v37  ;;  %v2360_v34 = vld [vmem:[#allocation2 + $0x1a0] sm:$0xf] }
 0x268   : > { %1203 = vmatpush.bf16.msra.mxu1 %v2215_v47 }
 0x269   : > { %v909_v12 = vpack.c.bf16 %v905_v13, %v903_v10 }
 0x26a   : > { %1221 = vmatpush.bf16.msra.mxu2 %v2227_v43  ;;  %v2394_v43 = vld [vmem:[#allocation2 + $0x1e8] sm:$0xf0] }
 0x26b   : > { %1076 = vmatmul.bf16.gmra.mxu0 %v909_v12  ;;  %v2397_v48 = vor.u32 %v2614_v42, %v2394_v43  ;;  %v2604_v42 = vld [vmem:[#allocation2 + $0x194] sm:$0xf] }
 0x26c   : > { %1532 = vmatpush.bf16.msrb.mxu1 %v2401_v36  ;;  %v2606_v36 = vld [vmem:[#allocation2 + $0x1a4] sm:$0xf] }
 0x26d   : > { %v2365_v39 = vor.u32 %v2606_v36, %v2362_v38 }
 0x26e   : > { %1222 = vmatpush.bf16.msra.mxu2 %v2219_v49  ;;  %v2384_v49 = vld [vmem:[#allocation2 + $0x1d0] sm:$0xf] }
 0x270   : > { %1533 = vmatpush.bf16.msrb.mxu1 %v2393_v45 }
 0x272   : > { %1551 = vmatpush.bf16.msrb.mxu2 %v2405_v41  ;;  %v2605_v41 = vld [vmem:[#allocation2 + $0x194] sm:$0xf0] }
 0x276   : > { %1552 = vmatpush.bf16.msrb.mxu2 %v2397_v48  ;;  %v2602_v48 = vld [vmem:[#allocation2 + $0x184] sm:$0xf] }
 0x2d8   : > { %v1053_v51 = vpop.f32.mrf.mxu3  ;;  %v1072_v52 = vpop.f32.mrf.mxu0 }
 0x2d9   : > { %v1054_v53 = vadd.f32 %v2685_v50, %v1053_v51  ;;  %v2612_v51 = vld [vmem:[#allocation2 + $0x1d4] sm:$0xf] }
 0x2db   : > { %v1073_v58 = vadd.f32 %v1072_v52, %v1054_v53  ;;  %v2386_v52 = vld [vmem:[#allocation2 + $0x1d8] sm:$0xf0] }
 0x2dd   : > { %v2944_v8 = vadd.f32 %v1073_v58, %v750_v3  ;;  %v2589_v3 = vld [vmem:[#allocation4 + $0x118] sm:$0xff]  ;;  %v2389_v58 = vor.u32 %v2612_v51, %v2386_v52  ;;  %v2686_v52 = vld [vmem:[%s3059_s6 + $0x2] ss:$0 sm:$0xff] }
 0x2de   : > { %1384 = vmatpush.bf16.msra.mxu3 %v2589_v3 }
 0x2df   : > { %v1086_v11 = vmax.f32 %v2944_v8, 0.0  ;;  %1553 = vmatpush.bf16.msrb.mxu2 %v2389_v58  ;;  %v2624_v58 = vld [vmem:[#allocation4 + $0x1b0] sm:$0xff] }
 0x2e0   : > { %v1055_v59 = vpop.f32.mrf.mxu3  ;;  %v1074_v60 = vpop.f32.mrf.mxu0 }
 0x2e1   : > { %v1056_v61 = vadd.f32 %v2685_v50, %v1055_v59  ;;  %v2376_v59 = vld [vmem:[#allocation2 + $0x1c0] sm:$0xf] }
 0x2e2   : > { %1385 = vmatpush.bf16.msra.mxu3 %v2588_v17 }
 0x2e3   : > { %v1075_v9 = vadd.f32 %v1074_v60, %v1056_v61  ;;  %v2611_v60 = vld [vmem:[#allocation2 + $0x1c4] sm:$0xf0] }
 0x2e5   : > { %v2948_v2 = vadd.f32 %v1075_v9, %v751_v5  ;;  %v2377_v9 = vor.u32 %v2611_v60, %v2376_v59  ;;  %v2632_v59 = vld [vmem:[#allocation4 + $0x1f0] sm:$0xff] }
 0x2e6   : > { %1386 = vmatpush.bf16.msra.mxu3 %v2587_v19 }
 0x2e7   : > { %v1087_v4 = vmax.f32 %v2948_v2, 0.0 }
 0x2e8   : > { %v1058_v7 = vpop.f32.mrf.mxu3  ;;  %v1077_v15 = vpop.f32.mrf.mxu0 }
 0x2e9   : > { %v1090_v62 = vpack.c.bf16 %v1087_v4, %v1086_v11  ;;  %v1059_v16 = vadd.f32 %v2685_v50, %v1058_v7 }
 0x2ea   : > { %1387 = vmatpush.bf16.msra.mxu3 %v2586_v26  ;;  %v2378_v26 = vld [vmem:[#allocation2 + $0x1c8] sm:$0xf0] }
 0x2eb   : > { %1204 = vmatmul.bf16.vlgmr.msra.gmra.mxu1 %v1090_v62  ;;  %1223 = vmatmul.bf16.vlgmr.msra.gmra.mxu2 %v1090_v62  ;;  %v1078_v0 = vadd.f32 %v1077_v15, %v1059_v16 }
 0x2ed   : > { %v2958_v23 = vadd.f32 %v1078_v0, %v752_v20  ;;  %v2597_v20 = vld [vmem:[#allocation4 + $0x158] sm:$0xff] }
 0x2ee   : > { %1403 = vmatpush.bf16.msrb.mxu0 %v2597_v20 }
 0x2ef   : > { %v1088_v12 = vmax.f32 %v2958_v23, 0.0  ;;  %v2620_v23 = vld [vmem:[#allocation4 + $0x190] sm:$0xff] }
 0x2f0   : > { %v1060_v5 = vpop.f32.mrf.mxu3  ;;  %v1079_v22 = vpop.f32.mrf.mxu0 }
 0x2f1   : > { %v1061_v18 = vadd.f32 %v2685_v50, %v1060_v5  ;;  %v2613_v50 = vld [vmem:[#allocation2 + $0x1d4] sm:$0xf0] }
 0x2f2   : > { %v2385_v55 = vor.u32 %v2613_v50, %v2384_v49  ;;  %v2346_v50 = vld [vmem:[#allocation2 + $0x188] sm:$0xf0] }
 0x2f3   : > { %v1080_v10 = vadd.f32 %v1079_v22, %v1061_v18  ;;  %v2349_v51 = vor.u32 %v2602_v48, %v2346_v50 }
 0x2f4   : > { %1534 = vmatpush.bf16.msrb.mxu1 %v2385_v55 }
 0x2f5   : > { %v2962_v13 = vadd.f32 %v1080_v10, %v753_v21  ;;  %v2596_v21 = vld [vmem:[#allocation4 + $0x150] sm:$0xff] }
 0x2f6   : > { %1404 = vmatpush.bf16.msrb.mxu0 %v2596_v21  ;;  %v2610_v21 = vld [vmem:[#allocation2 + $0x1c4] sm:$0xf] }
 0x2f7   : > { %v1089_v14 = vmax.f32 %v2962_v13, 0.0  ;;  %v2619_v13 = vld [vmem:[#allocation4 + $0x188] sm:$0xff] }
 0x2f8   : > { %1535 = vmatpush.bf16.msrb.mxu1 %v2377_v9  ;;  %v2623_v9 = vld [vmem:[#allocation4 + $0x1a8] sm:$0xff] }
 0x2f9   : > { %v1091_v24 = vpack.c.bf16 %v1089_v14, %v1088_v12 }
 0x2fa   : > { %1405 = vmatpush.bf16.msrb.mxu0 %v2595_v28  ;;  %v2381_v28 = vor.u32 %v2610_v21, %v2378_v26 }
 0x2fb   : > { %1209 = vmatmul.bf16.gmra.mxu1 %v1091_v24  ;;  %1228 = vmatmul.bf16.gmra.mxu2 %v1091_v24 }
 0x2fc   : > { %1554 = vmatpush.bf16.msrb.mxu2 %v2381_v28  ;;  %v2630_v28 = vld [vmem:[#allocation4 + $0x1e0] sm:$0xff] }
 0x2fe   : > { %1406 = vmatpush.bf16.msrb.mxu0 %v2594_v27  ;;  %v2368_v27 = vld [vmem:[#allocation2 + $0x1b0] sm:$0xf] }
 0x2ff   : > { %v2369_v32 = vor.u32 %v2609_v30, %v2368_v27  ;;  %v2618_v27 = vld [vmem:[#allocation4 + $0x180] sm:$0xff]  ;;  %v2627_v30 = vld [vmem:[#allocation4 + $0x1c8] sm:$0xff] }
 0x301   : > { %1536 = vmatpush.bf16.msrb.mxu1 %v2369_v32  ;;  %v2341_v32 = vld [vmem:[%s3057_s4 + $0x6] sm:$0x3] }
 0x368   : > { %v1205_v29 = vpop.f32.mrf.mxu1 }
 0x369   : > { %v1206_v40 = vadd.f32 %v1205_v29, %v1112_v31  ;;  %v2608_v29 = vld [vmem:[#allocation2 + $0x1b4] sm:$0xf] }
 0x36b   : > { %v1234_v53 = vmax.f32 %v1206_v40, 0.0  ;;  %v2352_v40 = vld [vmem:[#allocation2 + $0x190] sm:$0xf] }
 0x36c   : > { %v2353_v43 = vor.u32 %v2605_v41, %v2352_v40 }
 0x36e   : > { %v1224_v35 = vpop.f32.mrf.mxu2 }
 0x36f   : > { %v1225_v56 = vadd.f32 %v1224_v35, %v1113_v46  ;;  %v2607_v35 = vld [vmem:[#allocation2 + $0x1a4] sm:$0xf0] }
 0x370   : > { %v1207_v44 = vpop.f32.mrf.mxu1  ;;  %v2361_v37 = vor.u32 %v2607_v35, %v2360_v34  ;;  %v2641_v34 = vld [vmem:[%s3060_s7 + $0x38] sm:$0xff] }
 0x371   : > { %v1208_v47 = vadd.f32 %v1207_v44, %v1112_v31  ;;  %v1235_v6 = vmax.f32 %v1225_v56, 0.0  ;;  %v2354_v44 = vld [vmem:[#allocation2 + $0x198] sm:$0xf0] }
 0x372   : > { %1537 = vmatpush.bf16.msrb.mxu1 %v2361_v37  ;;  %v2357_v45 = vor.u32 %v2604_v42, %v2354_v44  ;;  %v2625_v56 = vld [vmem:[#allocation4 + $0x1b8] sm:$0xff]  ;;  %v2640_v37 = vld [vmem:[%s3060_s7 + $0x30] sm:$0xff] }
 0x373   : > { %v1236_v54 = vmax.f32 %v1208_v47, 0.0  ;;  %v2603_v47 = vld [vmem:[#allocation2 + $0x184] sm:$0xf0]  ;;  %1716 = vmatpush.bf16.msrb.mxu3 %v2625_v56 }
 0x375   : > { %v1242_v57 = vpack.c.bf16 %v1236_v54, %v1234_v53 }
 0x376   : > { %v1226_v61 = vpop.f32.mrf.mxu2  ;;  %1538 = vmatpush.bf16.msrb.mxu1 %v2353_v43  ;;  %v2639_v43 = vld [vmem:[%s3060_s7 + $0x28] sm:$0xff] }
 0x377   : > { %v1227_v63 = vadd.f32 %v1226_v61, %v1113_v46  ;;  %1388 = vmatmul.bf16.vlgmr.msra.gmra.mxu3 %v1242_v57  ;;  %v2633_v57 = vld [vmem:[#allocation4 + $0x1f8] sm:$0xff] }
 0x378   : > { %v1210_v1 = vpop.f32.mrf.mxu1  ;;  %1735 = vmatpush.bf16.msra.mxu0 %v2633_v57  ;;  %1717 = vmatpush.bf16.msrb.mxu3 %v2624_v58 }
 0x379   : > { %v1237_v7 = vmax.f32 %v1227_v63, 0.0  ;;  %v1211_v3 = vadd.f32 %v1210_v1, %v1112_v31 }
 0x37b   : > { %v1243_v15 = vpack.c.bf16 %v1237_v7, %v1235_v6  ;;  %v1238_v5 = vmax.f32 %v1211_v3, 0.0  ;;  %v2631_v6 = vld [vmem:[#allocation4 + $0x1e8] sm:$0xff]  ;;  %v2622_v3 = vld [vmem:[#allocation4 + $0x1a0] sm:$0xff] }
 0x37c   : > { %1736 = vmatpush.bf16.msra.mxu0 %v2632_v59  ;;  %1718 = vmatpush.bf16.msrb.mxu3 %v2623_v9 }
 0x37d   : > { %1407 = vmatmul.bf16.vlgmr.msrb.gmra.mxu0 %v1243_v15 }
 0x37e   : > { %v1229_v62 = vpop.f32.mrf.mxu2 }
 0x37f   : > { %v1230_v22 = vadd.f32 %v1229_v62, %v1113_v46 }
 0x380   : > { %v1212_v16 = vpop.f32.mrf.mxu1  ;;  %1737 = vmatpush.bf16.msra.mxu0 %v2631_v6  ;;  %1719 = vmatpush.bf16.msrb.mxu3 %v2622_v3  ;;  %v2638_v6 = vld [vmem:[%s3060_s7 + $0x20] sm:$0xff]  ;;  %v2636_v3 = vld [vmem:[%s3060_s7 + $0x10] sm:$0xff] }
 0x381   : > { %v1213_v0 = vadd.f32 %v1212_v16, %v1112_v31  ;;  %v1239_v17 = vmax.f32 %v1230_v22, 0.0  ;;  %v2370_v31 = vld [vmem:[#allocation2 + $0x1b8] sm:$0xf0] }
 0x382   : > { %v2373_v33 = vor.u32 %v2608_v29, %v2370_v31  ;;  %v2626_v29 = vld [vmem:[#allocation4 + $0x1c0] sm:$0xff] }
 0x383   : > { %v1240_v18 = vmax.f32 %v1213_v0, 0.0 }
 0x384   : > { %1555 = vmatpush.bf16.msrb.mxu2 %v2373_v33  ;;  %1738 = vmatpush.bf16.msra.mxu0 %v2630_v28  ;;  %v1448_v33 = vperm.slane %v2341_v32, 0 }
 0x385   : > { %v1244_v10 = vpack.c.bf16 %v1240_v18, %v1238_v5 }
 0x386   : > { %v1231_v24 = vpop.f32.mrf.mxu2 }
 0x387   : > { %v1232_v25 = vadd.f32 %v1231_v24, %v1113_v46  ;;  %1393 = vmatmul.bf16.gmra.mxu3 %v1244_v10  ;;  %v2344_v46 = vld [vmem:[#allocation2 + $0x180] sm:$0xf] }
 0x388   : > { %1556 = vmatpush.bf16.msrb.mxu2 %v2365_v39  ;;  %v2345_v49 = vor.u32 %v2603_v47, %v2344_v46  ;;  %v1449_v39 = vperm.slane %v2341_v32, 1 }
 0x389   : > { %v1241_v20 = vmax.f32 %v1232_v25, 0.0 }
 0x38a   : > { %1539 = vmatpush.bf16.msrb.mxu1 %v2345_v49 }
 0x38b   : > { %v1245_v19 = vpack.c.bf16 %v1241_v20, %v1239_v17 }
 0x38c   : > { %1557 = vmatpush.bf16.msrb.mxu2 %v2357_v45 }
 0x38d   : > { %1412 = vmatmul.bf16.gmra.mxu0 %v1245_v19 }
 0x38e   : > { %1832 = vmatpush.bf16.msra.mxu1 %v2641_v34 }
 0x390   : > { %1558 = vmatpush.bf16.msrb.mxu2 %v2349_v51 }
 0x392   : > { %1833 = vmatpush.bf16.msra.mxu1 %v2640_v37 }
 0x394   : > { %2642 = vmatpush.bf16.msra.mxu2 %v2641_v34 }
 0x396   : > { %1834 = vmatpush.bf16.msra.mxu1 %v2639_v43 }
 0x398   : > { %2643 = vmatpush.bf16.msra.mxu2 %v2640_v37  ;;  %v2688_v37 = vld [vmem:[%s3061_s8] ss:$0 sm:$0xff] }
 0x39a   : > { %1835 = vmatpush.bf16.msra.mxu1 %v2638_v6 }
 0x39c   : > { %2644 = vmatpush.bf16.msra.mxu2 %v2639_v43 }
 0x3a0   : > { %2645 = vmatpush.bf16.msra.mxu2 %v2638_v6 }
 0x3fa   : > { %v1389_v53 = vpop.f32.mrf.mxu3  ;;  %v1408_v54 = vpop.f32.mrf.mxu0 }
 0x3fb   : > { %v1390_v55 = vadd.f32 %v2686_v52, %v1389_v53 }
 0x3fd   : > { %v1409_v60 = vadd.f32 %v1408_v54, %v1390_v55 }
 0x3ff   : > { %v2978_v7 = vadd.f32 %v1409_v60, %v1086_v11  ;;  %v2621_v11 = vld [vmem:[#allocation4 + $0x198] sm:$0xff] }
 0x400   : > { %1720 = vmatpush.bf16.msrb.mxu3 %v2621_v11 }
 0x401   : > { %v1422_v16 = vmax.f32 %v2978_v7, 0.0 }
 0x402   : > { %v1391_v61 = vpop.f32.mrf.mxu3  ;;  %v1410_v63 = vpop.f32.mrf.mxu0 }
 0x403   : > { %v1392_v1 = vadd.f32 %v2686_v52, %v1391_v61 }
 0x404   : > { %1721 = vmatpush.bf16.msrb.mxu3 %v2620_v23 }
 0x405   : > { %v1411_v15 = vadd.f32 %v1410_v63, %v1392_v1 }
 0x407   : > { %v2982_v62 = vadd.f32 %v1411_v15, %v1087_v4  ;;  %v2637_v15 = vld [vmem:[%s3060_s7 + $0x18] sm:$0xff] }
 0x408   : > { %1722 = vmatpush.bf16.msrb.mxu3 %v2619_v13  ;;  %1836 = vmatpush.bf16.msra.mxu1 %v2637_v15 }
 0x409   : > { %v1423_v0 = vmax.f32 %v2982_v62, 0.0  ;;  %2646 = vmatpush.bf16.msra.mxu2 %v2637_v15 }
 0x40a   : > { %v1394_v5 = vpop.f32.mrf.mxu3  ;;  %v1413_v18 = vpop.f32.mrf.mxu0 }
 0x40b   : > { %v1426_v8 = vpack.c.bf16 %v1423_v0, %v1422_v16  ;;  %v1395_v22 = vadd.f32 %v2686_v52, %v1394_v5  ;;  %v2635_v5 = vld [vmem:[%s3060_s7 + $0x8] sm:$0xff] }
 0x40c   : > { %1723 = vmatpush.bf16.msrb.mxu3 %v2618_v27  ;;  %1837 = vmatpush.bf16.msra.mxu1 %v2636_v3 }
 0x40d   : > { %1540 = vmatmul.bf16.vlgmr.msrb.gmra.mxu1 %v1426_v8  ;;  %1559 = vmatmul.bf16.vlgmr.msrb.gmra.mxu2 %v1426_v8  ;;  %v1414_v2 = vadd.f32 %v1413_v18, %v1395_v22  ;;  %v2634_v18 = vld [vmem:[%s3060_s7] sm:$0xff] }
 0x40e   : > { %2647 = vmatpush.bf16.msra.mxu2 %v2636_v3  ;;  %v2687_v8 = vld [vmem:[%s3059_s6 + $0x3] ss:$0 sm:$0xff] }
 0x40f   : > { %v2992_v25 = vadd.f32 %v1414_v2, %v1088_v12  ;;  %v2629_v12 = vld [vmem:[#allocation4 + $0x1d8] sm:$0xff] }
 0x410   : > { %1739 = vmatpush.bf16.msra.mxu0 %v2629_v12  ;;  %1838 = vmatpush.bf16.msra.mxu1 %v2635_v5 }
 0x411   : > { %v1424_v19 = vmax.f32 %v2992_v25, 0.0 }
 0x412   : > { %v1396_v4 = vpop.f32.mrf.mxu3  ;;  %v1415_v24 = vpop.f32.mrf.mxu0  ;;  %2648 = vmatpush.bf16.msra.mxu2 %v2635_v5 }
 0x413   : > { %v1397_v10 = vadd.f32 %v2686_v52, %v1396_v4 }
 0x414   : > { %1839 = vmatpush.bf16.msra.mxu1 %v2634_v18 }
 0x415   : > { %v1416_v17 = vadd.f32 %v1415_v24, %v1397_v10 }
 0x416   : > { %2649 = vmatpush.bf16.msra.mxu2 %v2634_v18 }
 0x417   : > { %v2996_v20 = vadd.f32 %v1416_v17, %v1089_v14  ;;  %v2628_v14 = vld [vmem:[#allocation4 + $0x1d0] sm:$0xff] }
 0x418   : > { %1740 = vmatpush.bf16.msra.mxu0 %v2628_v14 }
 0x419   : > { %v1425_v21 = vmax.f32 %v2996_v20, 0.0 }
 0x41b   : > { %v1427_v26 = vpack.c.bf16 %v1425_v21, %v1424_v19 }
 0x41c   : > { %1741 = vmatpush.bf16.msra.mxu0 %v2627_v30 }
 0x41d   : > { %1545 = vmatmul.bf16.gmra.mxu1 %v1427_v26  ;;  %1564 = vmatmul.bf16.gmra.mxu2 %v1427_v26 }
 0x420   : > { %1742 = vmatpush.bf16.msra.mxu0 %v2626_v29 }
 0x48a   : > { %v1541_v31 = vpop.f32.mrf.mxu1 }
 0x48b   : > { %v1542_v36 = vadd.f32 %v1541_v31, %v1448_v33 }
 0x48d   : > { %v1570_v41 = vmax.f32 %v1542_v36, 0.0 }
 0x490   : > { %v1560_v35 = vpop.f32.mrf.mxu2 }
 0x491   : > { %v1561_v44 = vadd.f32 %v1560_v35, %v1449_v39 }
 0x492   : > { %v1543_v38 = vpop.f32.mrf.mxu1 }
 0x493   : > { %v1544_v40 = vadd.f32 %v1543_v38, %v1448_v33  ;;  %v1571_v49 = vmax.f32 %v1561_v44, 0.0 }
 0x495   : > { %v1572_v42 = vmax.f32 %v1544_v40, 0.0 }
 0x497   : > { %v1578_v45 = vpack.c.bf16 %v1572_v42, %v1570_v41 }
 0x498   : > { %v1562_v46 = vpop.f32.mrf.mxu2 }
 0x499   : > { %v1563_v47 = vadd.f32 %v1562_v46, %v1449_v39  ;;  %1724 = vmatmul.bf16.vlgmr.msrb.gmra.mxu3 %v1578_v45 }
 0x49a   : > { %v1546_v48 = vpop.f32.mrf.mxu1 }
 0x49b   : > { %v1573_v50 = vmax.f32 %v1563_v47, 0.0  ;;  %v1547_v53 = vadd.f32 %v1546_v48, %v1448_v33 }
 0x49d   : > { %v1579_v51 = vpack.c.bf16 %v1573_v50, %v1571_v49  ;;  %v1574_v56 = vmax.f32 %v1547_v53, 0.0 }
 0x49f   : > { %1743 = vmatmul.bf16.vlgmr.msra.gmra.mxu0 %v1579_v51 }
 0x4a0   : > { %v1565_v52 = vpop.f32.mrf.mxu2 }
 0x4a1   : > { %v1566_v58 = vadd.f32 %v1565_v52, %v1449_v39 }
 0x4a2   : > { %v1548_v54 = vpop.f32.mrf.mxu1 }
 0x4a3   : > { %v1549_v55 = vadd.f32 %v1548_v54, %v1448_v33  ;;  %v1575_v63 = vmax.f32 %v1566_v58, 0.0 }
 0x4a5   : > { %v1576_v57 = vmax.f32 %v1549_v55, 0.0 }
 0x4a7   : > { %v1580_v59 = vpack.c.bf16 %v1576_v57, %v1574_v56 }
 0x4a8   : > { %v1567_v60 = vpop.f32.mrf.mxu2 }
 0x4a9   : > { %v1568_v61 = vadd.f32 %v1567_v60, %v1449_v39  ;;  %1729 = vmatmul.bf16.gmra.mxu3 %v1580_v59 }
 0x4ab   : > { %v1577_v1 = vmax.f32 %v1568_v61, 0.0 }
 0x4ad   : > { %v1581_v9 = vpack.c.bf16 %v1577_v1, %v1575_v63 }
 0x4af   : > { %1748 = vmatmul.bf16.gmra.mxu0 %v1581_v9 }
 0x51c   : > { %v1725_v11 = vpop.f32.mrf.mxu3  ;;  %v1744_v22 = vpop.f32.mrf.mxu0 }
 0x51d   : > { %v1726_v2 = vadd.f32 %v2687_v8, %v1725_v11 }
 0x51f   : > { %v1745_v4 = vadd.f32 %v1744_v22, %v1726_v2 }
 0x521   : > { %v1754_v26 = vadd.f32 %v1745_v4, %v1422_v16 }
 0x523   : > { %v1758_v12 = vmax.f32 %v1754_v26, 0.0 }
 0x524   : > { %v1727_v10 = vpop.f32.mrf.mxu3  ;;  %v1746_v24 = vpop.f32.mrf.mxu0 }
 0x525   : > { %v1728_v17 = vadd.f32 %v2687_v8, %v1727_v10 }
 0x527   : > { %v1747_v28 = vadd.f32 %v1746_v24, %v1728_v17 }
 0x529   : > { %v1755_v23 = vadd.f32 %v1747_v28, %v1423_v0 }
 0x52b   : > { %v1759_v13 = vmax.f32 %v1755_v23, 0.0 }
 0x52c   : > { %v1730_v14 = vpop.f32.mrf.mxu3  ;;  %v1749_v27 = vpop.f32.mrf.mxu0 }
 0x52d   : > { %v1762_v30 = vpack.c.bf16 %v1759_v13, %v1758_v12  ;;  %v1731_v29 = vadd.f32 %v2687_v8, %v1730_v14 }
 0x52f   : > { %1840 = vmatmul.bf16.vlgmr.msra.gmra.mxu1 %v1762_v30  ;;  %v1750_v32 = vadd.f32 %v1749_v27, %v1731_v29 }
 0x531   : > { %v1756_v7 = vadd.f32 %v1750_v32, %v1424_v19 }
 0x533   : > { %v1760_v0 = vmax.f32 %v1756_v7, 0.0 }
 0x534   : > { %v1732_v31 = vpop.f32.mrf.mxu3  ;;  %v1751_v34 = vpop.f32.mrf.mxu0 }
 0x535   : > { %v1733_v33 = vadd.f32 %v2687_v8, %v1732_v31 }
 0x537   : > { %v1752_v16 = vadd.f32 %v1751_v34, %v1733_v33 }
 0x539   : > { %v1757_v62 = vadd.f32 %v1752_v16, %v1425_v21 }
 0x53b   : > { %v1761_v35 = vmax.f32 %v1757_v62, 0.0 }
 0x53d   : > { %v1763_v36 = vpack.c.bf16 %v1761_v35, %v1760_v0 }
 0x53f   : > { %1845 = vmatmul.bf16.vlgmr.msra.gmra.mxu2 %v1763_v36 }
 0x5ac   : > { %v1841_v38 = vpop.f32.mrf.mxu1 }
 0x5ad   : > { %v1842_v25 = vadd.f32 %v2688_v37, %v1841_v38 }
 0x5af   : > { %1852 = vst.msk [vmem:[%s368_s18] sm:$0xff] %vm1851_vm2, %v1842_v25 }
 0x5b4   : > { %v1843_v19 = vpop.f32.mrf.mxu1 }
 0x5b5   : > { %v1844_v20 = vadd.f32 %v2688_v37, %v1843_v19 }
 0x5b7   : > { %1853 = vst.msk [vmem:[%s368_s18 + $0x8] sm:$0xff] %vm1851_vm2, %v1844_v20 }
 0x5c2   : > { %v1846_v21 = vpop.f32.mrf.mxu2 }
 0x5c3   : > { %v1847_v39 = vadd.f32 %v2688_v37, %v1846_v21 }
 0x5c5   : > { %1854 = vst.msk [vmem:[%s368_s18 + $0x10] sm:$0xff] %vm1851_vm2, %v1847_v39 }
 0x5ca   : > { %v1848_v40 = vpop.f32.mrf.mxu2 }
 0x5cb   : > { %v1849_v41 = vadd.f32 %v2688_v37, %v1848_v40 }
 0x5cd   : > { %1855 = vst.msk [vmem:[%s368_s18 + $0x18] sm:$0xff] %vm1851_vm2, %v1849_v41 }
 0x5ce PF: > { %s21_s30 = sadd.s32 1, %s2763_s30  }
 0x5cf   : > { %p18_p7 = scmp.ge.s32.totalorder %s21_s30, 4  }
 0x5d1   :  { %20 = sbr.rel (!%p18_p7) target bundleno = 2 (0x2), region = 107 }
 0x5d6   :  { %1878 = vsyncpa [#allocation3], 1 }
 0x5d7   :  { %1880 = vsyncpa [#allocation3 + $0x1], 1 }
 0x5d8   :  { %1881 = vsyncpa [#allocation5], 1 }

</bundles_post_ra>
